<compile_context>
chip_gen: v5e
topology: v5e:2x2
jax: 0.10.0
libtpu: 0.0.40
codegen_flags: <defaults>
</compile_context>

<pallas_src>
import jax
import jax.numpy as jnp
from jax.experimental import pallas as pl
from jax.experimental.pallas import tpu as pltpu

EMB_DIMS = 128
N_STREET = 1572
N_WARD = 430
N_DISTRICT = 25
ATTR_DIM = 5
OUT2 = 729
OUT3 = 81
K_PAD = 512          # 3*128 emb + 5 attr + 123 zero pad  (MXU depth-native)
OUT2_PAD = 768       # 729 -> 6 * 128 (lane-dense h2)
OUT3_PAD = 128       # 81  -> 128     (lane-dense h3)
BATCH_TILE = 1024    # max rows per grid step (tunable per generation)


def _cdiv(a, b):
    return -(-a // b)


def _round_up(x, m):
    return ((x + m - 1) // m) * m


def _choose_tile(B, max_tile=BATCH_TILE):
    """Pick (tile, padded_batch): tile <= max_tile, multiple of 8, small tail
    padding, and >=2 grid steps when B >= 16 so both v7x TensorCores engage."""
    Bp8 = _round_up(max(B, 8), 8)
    n = _cdiv(Bp8, max_tile)
    if Bp8 >= 16:
        n = max(n, 2)
    tb = _round_up(_cdiv(Bp8, n), 8)
    n = _cdiv(Bp8, tb)
    return tb, n * tb


def rent_mlp_kernel(x_ref, w2_ref, b2_ref, w3_ref, b3_ref, w4_ref, o_ref):
    f32 = jnp.float32
    bf16 = jnp.bfloat16
    # Fused linear2 (embeddings + folded attr linear) in ONE K=512 bf16 dot;
    # f32 accumulation happens on the MXU (MRB on v7x), not the VPU.
    h2 = jnp.dot(x_ref[...], w2_ref[...], preferred_element_type=f32)
    h2 = jnp.maximum(h2 + b2_ref[...], 0.0)                 # [tb, 768] f32
    # TODO(synk): training-mode dropout (p=0.1) not implemented; eval identity.
    h3 = jnp.dot(h2.astype(bf16), w3_ref[...], preferred_element_type=f32)
    h3 = jnp.maximum(h3 + b3_ref[...], 0.0)                 # [tb, 128] f32
    # linear4 (out_features=1): VPU multiply + XLU lane reduce, no N=1 matmul.
    res = jnp.sum(h3 * w4_ref[...], axis=-1)                # [tb] f32
    if o_ref.ndim == 1:
        o_ref[...] = res                                    # lane-dense store
    else:
        o_ref[...] = res[:, None]                           # (tb, 1) fallback


def prepare_params(params):
    """One-time weight preparation. Run ONCE at load time, not per call."""
    f32, bf16 = jnp.float32, jnp.bfloat16
    w2t = params["w2"].astype(f32).T                        # [512, 729]
    w2_emb = w2t[:3 * EMB_DIMS]                             # [384, 729]
    w2b = w2t[3 * EMB_DIMS:]                                # [128, 729]
    # Fold linear_attr into linear2 (exact linear composition):
    #   a@W2b = attr@(W_attr^T@W2b) + b_attr@W2b
    w2_attr = params["w_attr"].astype(f32).T @ w2b          # [5, 729]
    b2_fold = params["b_attr"].astype(f32) @ w2b + params["b2"].astype(f32)

    # Stack emb slices + folded attr rows + zero rows into ONE [512, 768] bf16.
    w2_fused = jnp.concatenate(
        [w2_emb, w2_attr,
         jnp.zeros((K_PAD - 3 * EMB_DIMS - ATTR_DIM, OUT2), f32)], axis=0)
    w2_fused = jnp.pad(w2_fused, ((0, 0), (0, OUT2_PAD - OUT2)))   # [512, 768]

    w3t = params["w3"].astype(f32).T                                # [729, 81]
    w3p = jnp.pad(w3t, ((0, OUT2_PAD - OUT2), (0, OUT3_PAD - OUT3)))
    w4p = jnp.pad(params["w4"].astype(f32), ((0, 0), (0, OUT3_PAD - OUT3)))

    return {
        "emb_street": params["emb_street"].astype(bf16),
        "emb_ward": params["emb_ward"].astype(bf16),
        "emb_district": params["emb_district"].astype(bf16),
        "w2": w2_fused.astype(bf16),                                 # [512,768]
        "b2": jnp.pad(b2_fold, (0, OUT2_PAD - OUT2))[None, :].astype(f32),
        "w3": w3p.astype(bf16),                                      # [768,128]
        "b3": jnp.pad(params["b3"].astype(f32), (0, OUT3_PAD - OUT3))[None, :],
        "w4": w4p,                                                   # [1,128] f32
        "b4": params["b4"].astype(f32).reshape(1, 1),                # folded in wrapper
    }


@jax.jit
def rent_model_forward(prep, attr, street, ward, district):
    bf16 = jnp.bfloat16
    B = attr.shape[0]
    tb, Bp = _choose_tile(B)
    n_steps = Bp // tb

    # Data-dependent embedding row gathers stay in XLA glue, but gather straight
    # into the single fused bf16 [Bp, 512] activation (one concat + one pad).
    s_e = jnp.take(prep["emb_street"], street, axis=0)
    w_e = jnp.take(prep["emb_ward"], ward, axis=0)
    d_e = jnp.take(prep["emb_district"], district, axis=0)
    x = jnp.concatenate([s_e, w_e, d_e, attr.astype(bf16)], axis=1)  # [B, 389]
    x = jnp.pad(x, ((0, Bp - B), (0, K_PAD - x.shape[1])))           # [Bp, 512]

    # Lane-dense 1-D output when the tile is a multiple of 128 (unmasked vst);
    # otherwise the safe (tb, 1) layout (sublane-aligned, full last dim).
    if tb % 128 == 0:
        out_shape = jax.ShapeDtypeStruct((Bp,), jnp.float32)
        out_spec = pl.BlockSpec((tb,), lambda i: (i,))
    else:
        out_shape = jax.ShapeDtypeStruct((Bp, 1), jnp.float32)
        out_spec = pl.BlockSpec((tb, 1), lambda i: (i, 0))

    def cst(arr):
        return pl.BlockSpec(arr.shape, lambda i: (0,) * arr.ndim)

    flops = 2 * Bp * (K_PAD * OUT2_PAD + OUT2_PAD * OUT3_PAD + OUT3_PAD)
    weight_bytes = sum(int(prep[k].size) * prep[k].dtype.itemsize
                       for k in ("w2", "b2", "w3", "b3", "w4"))
    bytes_accessed = weight_bytes + Bp * (K_PAD * 2 + 4)

    out = pl.pallas_call(
        rent_mlp_kernel,
        out_shape=out_shape,
        grid_spec=pl.GridSpec(
            grid=(n_steps,),
            in_specs=[pl.BlockSpec((tb, K_PAD), lambda i: (i, 0)),
                      cst(prep["w2"]), cst(prep["b2"]),
                      cst(prep["w3"]), cst(prep["b3"]),
                      cst(prep["w4"])],
            out_specs=out_spec,
        ),
        compiler_params=pltpu.CompilerParams(
            dimension_semantics=("parallel",)),
        cost_estimate=pl.CostEstimate(flops=flops, transcendentals=0,
                                      bytes_accessed=bytes_accessed),
    )(x, prep["w2"], prep["b2"], prep["w3"], prep["b3"], prep["w4"])

    # linear4 bias folded here (removes one kernel input / per-step broadcast).
    return out.reshape(Bp, 1)[:B] + prep["b4"]


def init_params(key):
    """Parameters in the original PyTorch layout ([out, in] weights, f32)."""
    ks = jax.random.split(key, 12)

    def lin(kw, kb, out_f, in_f):
        bound = 1.0 / jnp.sqrt(in_f)
        w = jax.random.uniform(kw, (out_f, in_f), jnp.float32, -bound, bound)
        b = jax.random.uniform(kb, (out_f,), jnp.float32, -bound, bound)
        return w, b

    w_attr, b_attr = lin(ks[3], ks[4], EMB_DIMS, ATTR_DIM)
    w2, b2 = lin(ks[5], ks[6], OUT2, EMB_DIMS * 4)
    w3, b3 = lin(ks[7], ks[8], OUT3, OUT2)
    w4, b4 = lin(ks[9], ks[10], 1, OUT3)
    return {
        "emb_street": jax.random.normal(ks[0], (N_STREET, EMB_DIMS), jnp.float32),
        "emb_ward": jax.random.normal(ks[1], (N_WARD, EMB_DIMS), jnp.float32),
        "emb_district": jax.random.normal(ks[2], (N_DISTRICT, EMB_DIMS), jnp.float32),
        "w_attr": w_attr, "b_attr": b_attr,
        "w2": w2, "b2": b2,
        "w3": w3, "b3": b3,
        "w4": w4, "b4": b4,
    }


def reference_forward(params, attr, street, ward, district):
    """Original f32 PyTorch semantics (eval mode)."""
    s = jnp.take(params["emb_street"], street, axis=0)
    w = jnp.take(params["emb_ward"], ward, axis=0)
    d = jnp.take(params["emb_district"], district, axis=0)
    a = attr @ params["w_attr"].T + params["b_attr"]
    x = jnp.concatenate([s, w, d, a], axis=1)
    x = jnp.maximum(x @ params["w2"].T + params["b2"], 0.0)
    x = jnp.maximum(x @ params["w3"].T + params["b3"], 0.0)
    return x @ params["w4"].T + params["b4"]


def prepared_reference(prep, attr, street, ward, district):
    """jnp mirror of the kernel math with the same prepared (bf16) weights."""
    f32, bf16 = jnp.float32, jnp.bfloat16
    s = jnp.take(prep["emb_street"], street, axis=0)
    w = jnp.take(prep["emb_ward"], ward, axis=0)
    d = jnp.take(prep["emb_district"], district, axis=0)
    x = jnp.concatenate([s, w, d, attr.astype(bf16)], axis=1)
    x = jnp.pad(x, ((0, 0), (0, K_PAD - x.shape[1])))
    h2 = jnp.maximum(jnp.dot(x, prep["w2"], preferred_element_type=f32)
                     + prep["b2"], 0.0)
    h3 = jnp.maximum(jnp.dot(h2.astype(bf16), prep["w3"],
                             preferred_element_type=f32) + prep["b3"], 0.0)
    return jnp.sum(h3 * prep["w4"], axis=-1, keepdims=True) + prep["b4"]


if __name__ == "__main__":
    key = jax.random.PRNGKey(0)
    kp, kdata = jax.random.split(key, 2)
    params = init_params(kp)
    prep = prepare_params(params)   # one-time weight prep

    # B=8: single-step grid; B=37: multi-step odd tile ((tb,1) out path);
    # B=256: two 128-row tiles (lane-dense 1-D out path, both v7x TCs).
    for B in (8, 37, 256):
        ka, ks, kw, kd = jax.random.split(jax.random.fold_in(kdata, B), 4)
        attr = jax.random.normal(ka, (B, ATTR_DIM), jnp.float32)
        street = jax.random.randint(ks, (B,), 0, N_STREET, jnp.int32)
        ward = jax.random.randint(kw, (B,), 0, N_WARD, jnp.int32)
        district = jax.random.randint(kd, (B,), 0, N_DISTRICT, jnp.int32)

        out = rent_model_forward(prep, attr, street, ward, district)
        out = jax.block_until_ready(out)
        assert out.shape == (B, 1)

        # Tight check vs a jnp mirror using the exact prepared (bf16/folded/
        # padded) weights -- validates the kernel math.
        ref_p = prepared_reference(prep, attr, street, ward, district)
        assert jnp.allclose(out, ref_p, atol=2e-3, rtol=2e-3), (B, out, ref_p)

        # Sanity check vs the original f32 semantics (bf16-weight tolerance).
        ref = reference_forward(params, attr, street, ward, district)
        assert jnp.allclose(out, ref, atol=5e-2, rtol=5e-2), (B, out, ref)

    print("KERNEL_OK")
</pallas_src>

<mosaic_0001>
module attributes {stable_mosaic.version = 11 : i64} {
  func.func @rent_mlp_kernel(%arg0: i32, %arg1: memref<8x512xbf16, #tpu.memory_space<vmem>>, %arg2: memref<512x768xbf16, #tpu.memory_space<vmem>>, %arg3: memref<1x768xf32, #tpu.memory_space<vmem>>, %arg4: memref<768x128xbf16, #tpu.memory_space<vmem>>, %arg5: memref<1x128xf32, #tpu.memory_space<vmem>>, %arg6: memref<1x128xf32, #tpu.memory_space<vmem>>, %arg7: memref<8x1xf32, #tpu.memory_space<vmem>>) attributes {dimension_semantics = [#tpu.dimension_semantics<parallel>], iteration_bounds = array<i64: 1>, scalar_prefetch = 0 : i64, scratch_operands = 0 : i64, tpu.core_type = #tpu.core_type<tc>, window_params = [{transform_indices = @transform_0, window_bounds = array<i64: 8, 512>}, {pipeline_mode = #tpu.pipeline_mode<synchronous>, transform_indices = @transform_1, window_bounds = array<i64: 512, 768>}, {pipeline_mode = #tpu.pipeline_mode<synchronous>, transform_indices = @transform_2, window_bounds = array<i64: 1, 768>}, {pipeline_mode = #tpu.pipeline_mode<synchronous>, transform_indices = @transform_3, window_bounds = array<i64: 768, 128>}, {pipeline_mode = #tpu.pipeline_mode<synchronous>, transform_indices = @transform_4, window_bounds = array<i64: 1, 128>}, {pipeline_mode = #tpu.pipeline_mode<synchronous>, transform_indices = @transform_5, window_bounds = array<i64: 1, 128>}, {transform_indices = @transform_6, window_bounds = array<i64: 8, 1>}]} {
    %c0 = arith.constant 0 : index
    %c0_0 = arith.constant 0 : index
    %0 = vector.load %arg1[%c0, %c0_0] : memref<8x512xbf16, #tpu.memory_space<vmem>>, vector<8x512xbf16>
    %c0_1 = arith.constant 0 : index
    %c0_2 = arith.constant 0 : index
    %1 = vector.load %arg2[%c0_1, %c0_2] : memref<512x768xbf16, #tpu.memory_space<vmem>>, vector<512x768xbf16>
    %cst = arith.constant dense<0.000000e+00> : vector<8x768xf32>
    %2 = tpu.matmul %0, %1, %cst {dimension_numbers = #tpu.dot_dimension_numbers<[1], [0], [0], [1], [0, 0, 1, 1], [], []>} : vector<8x512xbf16>, vector<512x768xbf16>, vector<8x768xf32> -> vector<8x768xf32>
    %c0_3 = arith.constant 0 : index
    %c0_4 = arith.constant 0 : index
    %3 = vector.load %arg3[%c0_3, %c0_4] : memref<1x768xf32, #tpu.memory_space<vmem>>, vector<1x768xf32>
    %4 = vector.broadcast %3 : vector<1x768xf32> to vector<8x768xf32>
    %5 = arith.addf %2, %4 : vector<8x768xf32>
    %cst_5 = arith.constant 0.000000e+00 : f32
    %6 = vector.broadcast %cst_5 : f32 to vector<8x768xf32>
    %7 = arith.maximumf %5, %6 : vector<8x768xf32>
    %8 = arith.truncf %7 : vector<8x768xf32> to vector<8x768xbf16>
    %c0_6 = arith.constant 0 : index
    %c0_7 = arith.constant 0 : index
    %9 = vector.load %arg4[%c0_6, %c0_7] : memref<768x128xbf16, #tpu.memory_space<vmem>>, vector<768x128xbf16>
    %cst_8 = arith.constant dense<0.000000e+00> : vector<8x128xf32>
    %10 = tpu.matmul %8, %9, %cst_8 {dimension_numbers = #tpu.dot_dimension_numbers<[1], [0], [0], [1], [0, 0, 1, 1], [], []>} : vector<8x768xbf16>, vector<768x128xbf16>, vector<8x128xf32> -> vector<8x128xf32>
    %c0_9 = arith.constant 0 : index
    %c0_10 = arith.constant 0 : index
    %11 = vector.load %arg5[%c0_9, %c0_10] : memref<1x128xf32, #tpu.memory_space<vmem>>, vector<1x128xf32>
    %12 = vector.broadcast %11 : vector<1x128xf32> to vector<8x128xf32>
    %13 = arith.addf %10, %12 : vector<8x128xf32>
    %cst_11 = arith.constant 0.000000e+00 : f32
    %14 = vector.broadcast %cst_11 : f32 to vector<8x128xf32>
    %15 = arith.maximumf %13, %14 : vector<8x128xf32>
    %c0_12 = arith.constant 0 : index
    %c0_13 = arith.constant 0 : index
    %16 = vector.load %arg6[%c0_12, %c0_13] : memref<1x128xf32, #tpu.memory_space<vmem>>, vector<1x128xf32>
    %17 = vector.broadcast %16 : vector<1x128xf32> to vector<8x128xf32>
    %18 = arith.mulf %15, %17 : vector<8x128xf32>
    %cst_14 = arith.constant dense<0.000000e+00> : vector<8xf32>
    %19 = vector.multi_reduction <add>, %18, %cst_14 [1] : vector<8x128xf32> to vector<8xf32>
    %20 = vector.shape_cast %19 : vector<8xf32> to vector<8x1xf32>
    %c0_15 = arith.constant 0 : index
    %c0_16 = arith.constant 0 : index
    %21 = vector.load %arg7[%c0_15, %c0_16] : memref<8x1xf32, #tpu.memory_space<vmem>>, vector<8x1xf32>
    tpu.vector_store %arg7[%c0_15, %c0_16], %20 {strides = array<i32>} : memref<8x1xf32, #tpu.memory_space<vmem>>, vector<8x1xf32>,
    return
  }
  func.func @transform_0(%arg0: i32) -> (i32, i32) {
    %c0_i32 = arith.constant 0 : i32
    %c0_i32_0 = arith.constant 0 : i32
    return %arg0, %c0_i32 : i32, i32
  }
  func.func @transform_1(%arg0: i32) -> (i32, i32) {
    %c0_i32 = arith.constant 0 : i32
    %c0_i32_0 = arith.constant 0 : i32
    %c0_i32_1 = arith.constant 0 : i32
    return %c0_i32, %c0_i32_0 : i32, i32
  }
  func.func @transform_2(%arg0: i32) -> (i32, i32) {
    %c0_i32 = arith.constant 0 : i32
    %c0_i32_0 = arith.constant 0 : i32
    %c0_i32_1 = arith.constant 0 : i32
    return %c0_i32, %c0_i32_0 : i32, i32
  }
  func.func @transform_3(%arg0: i32) -> (i32, i32) {
    %c0_i32 = arith.constant 0 : i32
    %c0_i32_0 = arith.constant 0 : i32
    %c0_i32_1 = arith.constant 0 : i32
    return %c0_i32, %c0_i32_0 : i32, i32
  }
  func.func @transform_4(%arg0: i32) -> (i32, i32) {
    %c0_i32 = arith.constant 0 : i32
    %c0_i32_0 = arith.constant 0 : i32
    %c0_i32_1 = arith.constant 0 : i32
    return %c0_i32, %c0_i32_0 : i32, i32
  }
  func.func @transform_5(%arg0: i32) -> (i32, i32) {
    %c0_i32 = arith.constant 0 : i32
    %c0_i32_0 = arith.constant 0 : i32
    %c0_i32_1 = arith.constant 0 : i32
    return %c0_i32, %c0_i32_0 : i32, i32
  }
  func.func @transform_6(%arg0: i32) -> (i32, i32) {
    %c0_i32 = arith.constant 0 : i32
    %c0_i32_0 = arith.constant 0 : i32
    return %arg0, %c0_i32 : i32, i32
  }
}

</mosaic_0001>

<bundles_post_ra>
// kernel: rent_model_forward.1
= control target key start
LH: loop header
LB: loop body
LE: loop exit
PB: predicated region body
PF: predicated region fallthrough
CT: control target
= control target key end

     0   :  { %11 = vsyncpa [#allocation3], 0  ;;  %s3420_s0 = inlined_call_operand.vmem [shape: bf16[8,512], index: 0, kind: input, shape index: {}]   ;;  %s3421_s1 = inlined_call_operand.hbm [shape: bf16[512,768], index: 1, kind: input, shape index: {}]   ;;  %s3422_s2 = inlined_call_operand.vmem [shape: f32[1,768], index: 2, kind: input, shape index: {}]   ;;  %s3423_s3 = inlined_call_operand.hbm [shape: bf16[768,128], index: 3, kind: input, shape index: {}]   ;;  %s3424_s4 = inlined_call_operand.vmem [shape: f32[1,128], index: 4, kind: input, shape index: {}]   ;;  %s3425_s5 = inlined_call_operand.vmem [shape: f32[1,128], index: 5, kind: input, shape index: {}]   ;;  %s3426_s6 = inlined_call_operand.vmem [shape: f32[8,1], index: 6, kind: output, shape index: {}]  }
   0x1   :  { %s19_s23 = sshll.u32 %s3421_s1, 4  ;;  %s20_s23 = int_to_ptr.hbm [resolvable:$true] %s19_s23 }
   0x2   :  { %12 = vsyncpa [#allocation5], 0  ;;  %s3303_s24 = smov [#allocation2]   ;;  %s34_s28 = sshll.u32 %s3423_s3, 4  ;;  %s35_s28 = int_to_ptr.hbm [resolvable:$true] %s34_s28 }
   0x3   :  { %s21_s25 = sshll.u32 %s3303_s24, 4  ;;  %s3304_s29 = smov 384   ;;  %s22_s25 = int_to_ptr.vmem [resolvable:$true] %s21_s25 }
   0x4   :  { %s3305_s30 = smov 24   ;;  %s3306_s7 = smov [#allocation4]  }
   0x5   :  { %27 = dma.hbm_to_vmem [thread:$0]  %s20_s23, 24576, %s22_s25, [#allocation3], %s3304_s29, %s3304_s29, %s3305_s30  }
   0x6   :  { %s36_s8 = sshll.u32 %s3306_s7, 4  ;;  %s3307_s9 = smov 64   ;;  %s37_s8 = int_to_ptr.vmem [resolvable:$true] %s36_s8 }
   0x7   :  { %s3308_s10 = smov 4  }
   0x8   :  { %42 = dma.hbm_to_vmem [thread:$0]  %s35_s28, 6144, %s37_s8, [#allocation5], %s3307_s9, %s3307_s9, %s3308_s10  }
   0x9   :  { %3299 = dma.done.wait [#allocation3], 24576  }
   0xa   :  { %3300 = vsyncadd [#allocation3], 4294942720 }
   0xb   :  { %3301 = dma.done.wait [#allocation5], 6144  }
   0xc   :  { %3302 = vsyncadd [#allocation5], 4294961152  ;;  %v2213_v0 = vld [vmem:[#allocation2 + $0x150] sm:$0xf]  ;;  %v3048_v1 = vld [vmem:[#allocation2 + $0x164] sm:$0xf0] }
   0xd   :  { %v2405_v2 = vld [vmem:[#allocation2 + $0x2d0] sm:$0xf]  ;;  %v2214_v3 = vor.u32 %v3048_v1, %v2213_v0  ;;  %v3096_v4 = vld [vmem:[#allocation2 + $0x2e4] sm:$0xf0]  ;;  %v2189_v11 = vld [vmem:[#allocation2 + $0x120] sm:$0xf] }
   0xe   :  { %v2597_v5 = vld [vmem:[#allocation2 + $0x450] sm:$0xf]  ;;  %v3144_v6 = vld [vmem:[#allocation2 + $0x464] sm:$0xf0]  ;;  %v2406_v7 = vor.u32 %v3096_v4, %v2405_v2  ;;  %v3042_v13 = vld [vmem:[#allocation2 + $0x134] sm:$0xf0] }
   0xf   :  { %v2598_v8 = vor.u32 %v3144_v6, %v2597_v5  ;;  %v2789_v9 = vld [vmem:[#allocation2 + $0x5d0] sm:$0xf]  ;;  %v3192_v10 = vld [vmem:[#allocation2 + $0x5e4] sm:$0xf0]  ;;  %1237 = vmatpush.bf16.msra.mxu0 %v2214_v3  ;;  %v2381_v14 = vld [vmem:[#allocation2 + $0x2a0] sm:$0xf]  ;;  %v2190_v16 = vor.u32 %v3042_v13, %v2189_v11 }
  0x10   :  { %v2790_v12 = vor.u32 %v3192_v10, %v2789_v9  ;;  %v3090_v15 = vld [vmem:[#allocation2 + $0x2b4] sm:$0xf0]  ;;  %1250 = vmatpush.bf16.msra.mxu1 %v2406_v7  ;;  %v2573_v18 = vld [vmem:[#allocation2 + $0x420] sm:$0xf]  ;;  %v2165_v23 = vld [vmem:[#allocation2 + $0xf0] sm:$0xf] }
  0x11   :  { %1263 = vmatpush.bf16.msra.mxu2 %v2598_v8  ;;  %v2382_v17 = vor.u32 %v3090_v15, %v2381_v14  ;;  %v3138_v19 = vld [vmem:[#allocation2 + $0x434] sm:$0xf0]  ;;  %v2765_v20 = vld [vmem:[#allocation2 + $0x5a0] sm:$0xf]  ;;  %v3036_v24 = vld [vmem:[#allocation2 + $0x104] sm:$0xf0] }
  0x12   :  { %1276 = vmatpush.bf16.msra.mxu3 %v2790_v12  ;;  %v2574_v21 = vor.u32 %v3138_v19, %v2573_v18  ;;  %v3186_v22 = vld [vmem:[#allocation2 + $0x5b4] sm:$0xf0]  ;;  %v2357_v26 = vld [vmem:[#allocation2 + $0x270] sm:$0xf]  ;;  %v3084_v27 = vld [vmem:[#allocation2 + $0x284] sm:$0xf0]  ;;  %v2166_v29 = vor.u32 %v3036_v24, %v2165_v23 }
  0x13   :  { %v2766_v25 = vor.u32 %v3186_v22, %v2765_v20  ;;  %v2549_v28 = vld [vmem:[#allocation2 + $0x3f0] sm:$0xf]  ;;  %1238 = vmatpush.bf16.msra.mxu0 %v2190_v16  ;;  %v3132_v30 = vld [vmem:[#allocation2 + $0x404] sm:$0xf0]  ;;  %v2358_v33 = vor.u32 %v3084_v27, %v2357_v26  ;;  %v2141_v35 = vld [vmem:[#allocation2 + $0xc0] sm:$0xf] }
  0x14   :  { %v2741_v31 = vld [vmem:[#allocation2 + $0x570] sm:$0xf]  ;;  %v3180_v32 = vld [vmem:[#allocation2 + $0x584] sm:$0xf0]  ;;  %1251 = vmatpush.bf16.msra.mxu1 %v2382_v17  ;;  %v2550_v34 = vor.u32 %v3132_v30, %v2549_v28  ;;  %v3030_v36 = vld [vmem:[#allocation2 + $0xd4] sm:$0xf0] }
  0x15   :  { %1264 = vmatpush.bf16.msra.mxu2 %v2574_v21  ;;  %v2333_v37 = vld [vmem:[#allocation2 + $0x240] sm:$0xf]  ;;  %v2742_v38 = vor.u32 %v3180_v32, %v2741_v31  ;;  %v3078_v39 = vld [vmem:[#allocation2 + $0x254] sm:$0xf0]  ;;  %v2142_v44 = vor.u32 %v3030_v36, %v2141_v35  ;;  %v2117_v47 = vld [vmem:[#allocation2 + $0x90] sm:$0xf] }
  0x16   :  { %1277 = vmatpush.bf16.msra.mxu3 %v2766_v25  ;;  %v2525_v40 = vld [vmem:[#allocation2 + $0x3c0] sm:$0xf]  ;;  %v3126_v41 = vld [vmem:[#allocation2 + $0x3d4] sm:$0xf0]  ;;  %v2334_v45 = vor.u32 %v3078_v39, %v2333_v37  ;;  %v3024_v48 = vld [vmem:[#allocation2 + $0xa4] sm:$0xf0] }
  0x17   :  { %v2717_v42 = vld [vmem:[#allocation2 + $0x540] sm:$0xf]  ;;  %v3174_v43 = vld [vmem:[#allocation2 + $0x554] sm:$0xf0]  ;;  %1239 = vmatpush.bf16.msra.mxu0 %v2166_v29  ;;  %v2526_v46 = vor.u32 %v3126_v41, %v2525_v40  ;;  %v2309_v49 = vld [vmem:[#allocation2 + $0x210] sm:$0xf]  ;;  %v2118_v56 = vor.u32 %v3024_v48, %v2117_v47 }
  0x18   :  { %1252 = vmatpush.bf16.msra.mxu1 %v2358_v33  ;;  %v2718_v50 = vor.u32 %v3174_v43, %v2717_v42  ;;  %v3072_v51 = vld [vmem:[#allocation2 + $0x224] sm:$0xf0]  ;;  %v2501_v52 = vld [vmem:[#allocation2 + $0x390] sm:$0xf]  ;;  %v2093_v59 = vld [vmem:[#allocation2 + $0x60] sm:$0xf] }
  0x19   :  { %1265 = vmatpush.bf16.msra.mxu2 %v2550_v34  ;;  %v3120_v53 = vld [vmem:[#allocation2 + $0x3a4] sm:$0xf0]  ;;  %v2693_v54 = vld [vmem:[#allocation2 + $0x510] sm:$0xf]  ;;  %v2310_v57 = vor.u32 %v3072_v51, %v2309_v49  ;;  %v3018_v60 = vld [vmem:[#allocation2 + $0x74] sm:$0xf0] }
  0x1a   :  { %1278 = vmatpush.bf16.msra.mxu3 %v2742_v38  ;;  %v3168_v55 = vld [vmem:[#allocation2 + $0x524] sm:$0xf0]  ;;  %v2502_v58 = vor.u32 %v3120_v53, %v2501_v52  ;;  %v2285_v61 = vld [vmem:[#allocation2 + $0x1e0] sm:$0xf]  ;;  %v3066_v63 = vld [vmem:[#allocation2 + $0x1f4] sm:$0xf0]  ;;  %v2094_v4 = vor.u32 %v3018_v60, %v2093_v59 }
  0x1b   :  { %1240 = vmatpush.bf16.msra.mxu0 %v2142_v44  ;;  %v2694_v62 = vor.u32 %v3168_v55, %v2693_v54  ;;  %v2477_v0 = vld [vmem:[#allocation2 + $0x360] sm:$0xf]  ;;  %v3114_v1 = vld [vmem:[#allocation2 + $0x374] sm:$0xf0]  ;;  %v2286_v5 = vor.u32 %v3066_v63, %v2285_v61  ;;  %v2069_v7 = vld [vmem:[#allocation2 + $0x30] sm:$0xf] }
  0x1c   :  { %1253 = vmatpush.bf16.msra.mxu1 %v2334_v45  ;;  %v2669_v2 = vld [vmem:[#allocation2 + $0x4e0] sm:$0xf]  ;;  %v3162_v3 = vld [vmem:[#allocation2 + $0x4f4] sm:$0xf0]  ;;  %v2478_v6 = vor.u32 %v3114_v1, %v2477_v0  ;;  %v3012_v8 = vld [vmem:[#allocation2 + $0x44] sm:$0xf0] }
  0x1d   :  { %1266 = vmatpush.bf16.msra.mxu2 %v2526_v46  ;;  %v2261_v9 = vld [vmem:[#allocation2 + $0x1b0] sm:$0xf]  ;;  %v2670_v10 = vor.u32 %v3162_v3, %v2669_v2  ;;  %v3060_v11 = vld [vmem:[#allocation2 + $0x1c4] sm:$0xf0]  ;;  %v2070_v16 = vor.u32 %v3012_v8, %v2069_v7  ;;  %v2045_v17 = vld [vmem:[#allocation2] sm:$0xf] }
  0x1e   :  { %1279 = vmatpush.bf16.msra.mxu3 %v2718_v50  ;;  %v2453_v12 = vld [vmem:[#allocation2 + $0x330] sm:$0xf]  ;;  %v3108_v13 = vld [vmem:[#allocation2 + $0x344] sm:$0xf0]  ;;  %v3006_v18 = vld [vmem:[#allocation2 + $0x14] sm:$0xf0]  ;;  %v2262_v19 = vor.u32 %v3060_v11, %v2261_v9 }
  0x1f   :  { %1241 = vmatpush.bf16.msra.mxu0 %v2118_v56  ;;  %v2645_v14 = vld [vmem:[#allocation2 + $0x4b0] sm:$0xf]  ;;  %v3156_v15 = vld [vmem:[#allocation2 + $0x4c4] sm:$0xf0]  ;;  %v2454_v20 = vor.u32 %v3108_v13, %v2453_v12  ;;  %v2237_v21 = vld [vmem:[#allocation2 + $0x180] sm:$0xf]  ;;  %v2046_v31 = vor.u32 %v3006_v18, %v2045_v17 }
  0x20   :  { %1254 = vmatpush.bf16.msra.mxu1 %v2310_v57  ;;  %v3054_v22 = vld [vmem:[#allocation2 + $0x194] sm:$0xf0]  ;;  %v2429_v23 = vld [vmem:[#allocation2 + $0x300] sm:$0xf]  ;;  %v2646_v24 = vor.u32 %v3156_v15, %v2645_v14  ;;  %v3045_v28 = vld [vmem:[#allocation2 + $0x154] sm:$0xf] }
  0x21   :  { %1267 = vmatpush.bf16.msra.mxu2 %v2502_v58  ;;  %v3102_v25 = vld [vmem:[#allocation2 + $0x314] sm:$0xf0]  ;;  %v2621_v26 = vld [vmem:[#allocation2 + $0x480] sm:$0xf]  ;;  %v2215_v29 = vld [vmem:[#allocation2 + $0x168] sm:$0xf0]  ;;  %v2238_v35 = vor.u32 %v3054_v22, %v2237_v21 }
  0x22   :  { %1280 = vmatpush.bf16.msra.mxu3 %v2694_v62  ;;  %v3150_v27 = vld [vmem:[#allocation2 + $0x494] sm:$0xf0]  ;;  %v3093_v30 = vld [vmem:[#allocation2 + $0x2d4] sm:$0xf]  ;;  %v2407_v32 = vld [vmem:[#allocation2 + $0x2e8] sm:$0xf0]  ;;  %v2430_v36 = vor.u32 %v3102_v25, %v2429_v23  ;;  %v2218_v40 = vor.u32 %v3045_v28, %v2215_v29 }
  0x23   :  { %1242 = vmatpush.bf16.msra.mxu0 %v2094_v4  ;;  %v3141_v33 = vld [vmem:[#allocation2 + $0x454] sm:$0xf]  ;;  %v2599_v34 = vld [vmem:[#allocation2 + $0x468] sm:$0xf0]  ;;  %v2622_v39 = vor.u32 %v3150_v27, %v2621_v26  ;;  %v2410_v41 = vor.u32 %v3093_v30, %v2407_v32  ;;  %v3039_v43 = vld [vmem:[#allocation2 + $0x124] sm:$0xf] }
  0x24   :  { %1255 = vmatpush.bf16.msra.mxu1 %v2286_v5  ;;  %v3189_v37 = vld [vmem:[#allocation2 + $0x5d4] sm:$0xf]  ;;  %v2791_v38 = vld [vmem:[#allocation2 + $0x5e8] sm:$0xf0]  ;;  %v2602_v42 = vor.u32 %v3141_v33, %v2599_v34  ;;  %v2191_v44 = vld [vmem:[#allocation2 + $0x138] sm:$0xf0] }
  0x25   :  { %1268 = vmatpush.bf16.msra.mxu2 %v2478_v6  ;;  %v3087_v45 = vld [vmem:[#allocation2 + $0x2a4] sm:$0xf]  ;;  %v2794_v46 = vor.u32 %v3189_v37, %v2791_v38  ;;  %v2383_v47 = vld [vmem:[#allocation2 + $0x2b8] sm:$0xf0]  ;;  %v2194_v52 = vor.u32 %v3039_v43, %v2191_v44  ;;  %v3033_v53 = vld [vmem:[#allocation2 + $0xf4] sm:$0xf] }
  0x26   :  { %1281 = vmatpush.bf16.msra.mxu3 %v2670_v10  ;;  %v3135_v48 = vld [vmem:[#allocation2 + $0x424] sm:$0xf]  ;;  %v2575_v49 = vld [vmem:[#allocation2 + $0x438] sm:$0xf0]  ;;  %v2386_v54 = vor.u32 %v3087_v45, %v2383_v47  ;;  %v2167_v56 = vld [vmem:[#allocation2 + $0x108] sm:$0xf0] }
  0x27   :  { %1243 = vmatpush.bf16.msra.mxu0 %v2070_v16  ;;  %v3183_v50 = vld [vmem:[#allocation2 + $0x5a4] sm:$0xf]  ;;  %v2767_v51 = vld [vmem:[#allocation2 + $0x5b8] sm:$0xf0]  ;;  %v2578_v55 = vor.u32 %v3135_v48, %v2575_v49  ;;  %v3081_v57 = vld [vmem:[#allocation2 + $0x274] sm:$0xf]  ;;  %v2170_v0 = vor.u32 %v3033_v53, %v2167_v56 }
  0x28   :  { %1256 = vmatpush.bf16.msra.mxu1 %v2262_v19  ;;  %v2359_v58 = vld [vmem:[#allocation2 + $0x288] sm:$0xf0]  ;;  %v2770_v59 = vor.u32 %v3183_v50, %v2767_v51  ;;  %v3129_v60 = vld [vmem:[#allocation2 + $0x3f4] sm:$0xf]  ;;  %v55_v3 = vld [vmem:[%s3420_s0] sm:$0xff]  ;;  %vm2035_vm0 = vcmask 7168  }
  0x29   :  { %1269 = vmatpush.bf16.msra.mxu2 %v2454_v20  ;;  %v2551_v61 = vld [vmem:[#allocation2 + $0x408] sm:$0xf0]  ;;  %v3177_v62 = vld [vmem:[#allocation2 + $0x574] sm:$0xf]  ;;  %v2362_v1 = vor.u32 %v3081_v57, %v2359_v58  ;;  %v3027_v5 = vld [vmem:[#allocation2 + $0xc4] sm:$0xf]  ;;  %v265_v9 = vunpack.c.l.b16 %v55_v3  ;;  %v266_v15 = vunpack.c.h.b16 %v55_v3 }
  0x2a   :  { %1282 = vmatpush.bf16.msra.mxu3 %v2646_v24  ;;  %v2743_v63 = vld [vmem:[#allocation2 + $0x588] sm:$0xf0]  ;;  %v2554_v4 = vor.u32 %v3129_v60, %v2551_v61  ;;  %v2143_v6 = vld [vmem:[#allocation2 + $0xd8] sm:$0xf0]  ;;  %v3075_v7 = vld [vmem:[#allocation2 + $0x244] sm:$0xf] }
  0x2b   :  { %1244 = vmatpush.bf16.msra.mxu0 %v2046_v31  ;;  %v56_v2 = vld [vmem:[%s3420_s0 + $0x8] sm:$0xff]  ;;  %v2746_v11 = vor.u32 %v3177_v62, %v2743_v63  ;;  %v2335_v12 = vld [vmem:[#allocation2 + $0x258] sm:$0xf0]  ;;  %v3123_v13 = vld [vmem:[#allocation2 + $0x3c4] sm:$0xf]  ;;  %v3358_v19 = vpack.c.b16 %v265_v9, %v265_v9  ;;  %v2146_v21 = vor.u32 %v3027_v5, %v2143_v6  ;;  %v3362_v22 = vpack.c.b16 %v266_v15, %v266_v15 }
  0x2c   :  { %1257 = vmatpush.bf16.msra.mxu1 %v2238_v35  ;;  %v267_v8 = vunpack.c.l.b16 %v56_v2  ;;  %v268_v10 = vunpack.c.h.b16 %v56_v2  ;;  %v2527_v14 = vld [vmem:[#allocation2 + $0x3d8] sm:$0xf0]  ;;  %v3171_v16 = vld [vmem:[#allocation2 + $0x544] sm:$0xf]  ;;  %v2338_v23 = vor.u32 %v3075_v7, %v2335_v12  ;;  %v3021_v25 = vld [vmem:[#allocation2 + $0x94] sm:$0xf] }
  0x2d   :  { %1270 = vmatpush.bf16.msra.mxu2 %v2430_v36  ;;  %v2719_v17 = vld [vmem:[#allocation2 + $0x558] sm:$0xf0]  ;;  %v2530_v24 = vor.u32 %v3123_v13, %v2527_v14  ;;  %v2119_v26 = vld [vmem:[#allocation2 + $0xa8] sm:$0xf0]  ;;  %v3069_v27 = vld [vmem:[#allocation2 + $0x214] sm:$0xf] }
  0x2e   :  { %1283 = vmatpush.bf16.msra.mxu3 %v2622_v39  ;;  %v3356_v18 = vpack.c.b16 %v267_v8, %v267_v8  ;;  %v3360_v20 = vpack.c.b16 %v268_v10, %v268_v10  ;;  %v2722_v28 = vor.u32 %v3171_v16, %v2719_v17  ;;  %v2311_v29 = vld [vmem:[#allocation2 + $0x228] sm:$0xf0]  ;;  %v3117_v30 = vld [vmem:[#allocation2 + $0x394] sm:$0xf]  ;;  %1245 = vmatmul.bf16.vlgmr.msra.gmra.mxu0 %v3358_v19  ;;  %v3015_v37 = vld [vmem:[#allocation2 + $0x64] sm:$0xf] }
  0x2f   :  { %1289 = vmatpush.bf16.msrb.mxu0 %v2218_v40  ;;  %v2503_v31 = vld [vmem:[#allocation2 + $0x3a8] sm:$0xf0]  ;;  %v3165_v32 = vld [vmem:[#allocation2 + $0x514] sm:$0xf]  ;;  %v2122_v34 = vor.u32 %v3021_v25, %v2119_v26  ;;  %1258 = vmatmul.bf16.vlgmr.msra.gmra.mxu1 %v3362_v22  ;;  %v2314_v35 = vor.u32 %v3069_v27, %v2311_v29  ;;  %v2095_v38 = vld [vmem:[#allocation2 + $0x78] sm:$0xf0] }
  0x30   :  { %1302 = vmatpush.bf16.msrb.mxu1 %v2410_v41  ;;  %1271 = vmatmul.bf16.vlgmr.msra.gmra.mxu2 %v3356_v18  ;;  %v2695_v33 = vld [vmem:[#allocation2 + $0x528] sm:$0xf0]  ;;  %v2506_v36 = vor.u32 %v3117_v30, %v2503_v31  ;;  %v3063_v39 = vld [vmem:[#allocation2 + $0x1e4] sm:$0xf]  ;;  %v2287_v41 = vld [vmem:[#allocation2 + $0x1f8] sm:$0xf0] }
  0x31   :  { %1315 = vmatpush.bf16.msrb.mxu2 %v2602_v42  ;;  %1284 = vmatmul.bf16.vlgmr.msra.gmra.mxu3 %v3360_v20  ;;  %v2698_v40 = vor.u32 %v3165_v32, %v2695_v33  ;;  %v3111_v42 = vld [vmem:[#allocation2 + $0x364] sm:$0xf]  ;;  %v2479_v43 = vld [vmem:[#allocation2 + $0x378] sm:$0xf0]  ;;  %v2290_v47 = vor.u32 %v3063_v39, %v2287_v41  ;;  %v3009_v49 = vld [vmem:[#allocation2 + $0x34] sm:$0xf] }
  0x32   :  { %1328 = vmatpush.bf16.msrb.mxu3 %v2794_v46  ;;  %v3159_v44 = vld [vmem:[#allocation2 + $0x4e4] sm:$0xf]  ;;  %v2671_v45 = vld [vmem:[#allocation2 + $0x4f8] sm:$0xf0]  ;;  %v2098_v46 = vor.u32 %v3015_v37, %v2095_v38  ;;  %v2482_v48 = vor.u32 %v3111_v42, %v2479_v43  ;;  %v2071_v50 = vld [vmem:[#allocation2 + $0x48] sm:$0xf0] }
  0x33   :  { %1290 = vmatpush.bf16.msrb.mxu0 %v2194_v52  ;;  %v3057_v51 = vld [vmem:[#allocation2 + $0x1b4] sm:$0xf]  ;;  %v2674_v52 = vor.u32 %v3159_v44, %v2671_v45  ;;  %v2263_v53 = vld [vmem:[#allocation2 + $0x1c8] sm:$0xf0]  ;;  %v2074_v58 = vor.u32 %v3009_v49, %v2071_v50  ;;  %v2047_v60 = vld [vmem:[#allocation2 + $0x18] sm:$0xf0] }
  0x34   :  { %1303 = vmatpush.bf16.msrb.mxu1 %v2386_v54  ;;  %v3105_v54 = vld [vmem:[#allocation2 + $0x334] sm:$0xf]  ;;  %v2647_v57 = vld [vmem:[#allocation2 + $0x4c8] sm:$0xf0]  ;;  %v2266_v61 = vor.u32 %v3057_v51, %v2263_v53  ;;  %v3051_v63 = vld [vmem:[#allocation2 + $0x184] sm:$0xf] }
  0x35   :  { %1316 = vmatpush.bf16.msrb.mxu2 %v2578_v55  ;;  %v2455_v55 = vld [vmem:[#allocation2 + $0x348] sm:$0xf0]  ;;  %v3153_v56 = vld [vmem:[#allocation2 + $0x4b4] sm:$0xf]  ;;  %v2431_v3 = vld [vmem:[#allocation2 + $0x318] sm:$0xf0] }
  0x36   :  { %1329 = vmatpush.bf16.msrb.mxu3 %v2770_v59  ;;  %v3003_v59 = vld [vmem:[#allocation2 + $0x4] sm:$0xf]  ;;  %v2458_v62 = vor.u32 %v3105_v54, %v2455_v55  ;;  %v2650_v2 = vor.u32 %v3153_v56, %v2647_v57  ;;  %v2623_v5 = vld [vmem:[#allocation2 + $0x498] sm:$0xf0]  ;;  %v2221_v6 = vld [vmem:[#allocation2 + $0x158] sm:$0xf] }
  0x37   :  { %1291 = vmatpush.bf16.msrb.mxu0 %v2170_v0  ;;  %v2239_v0 = vld [vmem:[#allocation2 + $0x198] sm:$0xf0]  ;;  %v3049_v7 = vld [vmem:[#allocation2 + $0x16c] sm:$0xf0]  ;;  %v2413_v8 = vld [vmem:[#allocation2 + $0x2d8] sm:$0xf]  ;;  %v2050_v9 = vor.u32 %v3003_v59, %v2047_v60 }
  0x38   :  { %1304 = vmatpush.bf16.msrb.mxu1 %v2362_v1  ;;  %v3099_v1 = vld [vmem:[#allocation2 + $0x304] sm:$0xf]  ;;  %v3097_v10 = vld [vmem:[#allocation2 + $0x2ec] sm:$0xf0]  ;;  %v2242_v13 = vor.u32 %v3051_v63, %v2239_v0  ;;  %v2797_v15 = vld [vmem:[#allocation2 + $0x5d8] sm:$0xf] }
  0x39   :  { %1317 = vmatpush.bf16.msrb.mxu2 %v2554_v4  ;;  %v3147_v4 = vld [vmem:[#allocation2 + $0x484] sm:$0xf]  ;;  %v3145_v12 = vld [vmem:[#allocation2 + $0x46c] sm:$0xf0]  ;;  %v2434_v14 = vor.u32 %v3099_v1, %v2431_v3  ;;  %v2197_v25 = vld [vmem:[#allocation2 + $0x128] sm:$0xf] }
  0x3a   :  { %1330 = vmatpush.bf16.msrb.mxu3 %v2746_v11  ;;  %v2605_v11 = vld [vmem:[#allocation2 + $0x458] sm:$0xf]  ;;  %v3193_v16 = vld [vmem:[#allocation2 + $0x5ec] sm:$0xf0]  ;;  %v2626_v17 = vor.u32 %v3147_v4, %v2623_v5  ;;  %v3043_v26 = vld [vmem:[#allocation2 + $0x13c] sm:$0xf0] }
  0x3b   :  { %1292 = vmatpush.bf16.msrb.mxu0 %v2146_v21  ;;  %v2222_v21 = vor.u32 %v3049_v7, %v2221_v6  ;;  %v2389_v27 = vld [vmem:[#allocation2 + $0x2a8] sm:$0xf]  ;;  %v3091_v29 = vld [vmem:[#allocation2 + $0x2bc] sm:$0xf0]  ;;  %v2173_v37 = vld [vmem:[#allocation2 + $0xf8] sm:$0xf] }
  0x3c   :  { %1305 = vmatpush.bf16.msrb.mxu1 %v2338_v23  ;;  %v2414_v23 = vor.u32 %v3097_v10, %v2413_v8  ;;  %v2581_v30 = vld [vmem:[#allocation2 + $0x428] sm:$0xf]  ;;  %v3139_v31 = vld [vmem:[#allocation2 + $0x43c] sm:$0xf0]  ;;  %v3037_v38 = vld [vmem:[#allocation2 + $0x10c] sm:$0xf0] }
  0x3d   :  { %1318 = vmatpush.bf16.msrb.mxu2 %v2530_v24  ;;  %v2606_v24 = vor.u32 %v3145_v12, %v2605_v11  ;;  %v2773_v32 = vld [vmem:[#allocation2 + $0x5a8] sm:$0xf]  ;;  %v3187_v33 = vld [vmem:[#allocation2 + $0x5bc] sm:$0xf0]  ;;  %v2365_v39 = vld [vmem:[#allocation2 + $0x278] sm:$0xf] }
  0x3e   :  { %1331 = vmatpush.bf16.msrb.mxu3 %v2722_v28  ;;  %v2798_v28 = vor.u32 %v3193_v16, %v2797_v15  ;;  %v3085_v41 = vld [vmem:[#allocation2 + $0x28c] sm:$0xf0]  ;;  %v2557_v42 = vld [vmem:[#allocation2 + $0x3f8] sm:$0xf]  ;;  %v2149_v49 = vld [vmem:[#allocation2 + $0xc8] sm:$0xf] }
  0x3f   :  { %1293 = vmatpush.bf16.msrb.mxu0 %v2122_v34  ;;  %v2198_v34 = vor.u32 %v3043_v26, %v2197_v25  ;;  %v3133_v43 = vld [vmem:[#allocation2 + $0x40c] sm:$0xf0]  ;;  %v2749_v44 = vld [vmem:[#allocation2 + $0x578] sm:$0xf]  ;;  %v3031_v50 = vld [vmem:[#allocation2 + $0xdc] sm:$0xf0] }
  0x40   :  { %1306 = vmatpush.bf16.msrb.mxu1 %v2314_v35  ;;  %v2390_v35 = vor.u32 %v3091_v29, %v2389_v27  ;;  %v3181_v45 = vld [vmem:[#allocation2 + $0x58c] sm:$0xf0]  ;;  %v2341_v51 = vld [vmem:[#allocation2 + $0x248] sm:$0xf]  ;;  %v3079_v53 = vld [vmem:[#allocation2 + $0x25c] sm:$0xf0] }
  0x41   :  { %1319 = vmatpush.bf16.msrb.mxu2 %v2506_v36  ;;  %v2582_v36 = vor.u32 %v3139_v31, %v2581_v30  ;;  %v2533_v54 = vld [vmem:[#allocation2 + $0x3c8] sm:$0xf]  ;;  %v3127_v55 = vld [vmem:[#allocation2 + $0x3dc] sm:$0xf0]  ;;  %v2342_v59 = vor.u32 %v3079_v53, %v2341_v51  ;;  %v2317_v63 = vld [vmem:[#allocation2 + $0x218] sm:$0xf] }
  0x42   :  { %1332 = vmatpush.bf16.msrb.mxu3 %v2698_v40  ;;  %v2774_v40 = vor.u32 %v3187_v33, %v2773_v32  ;;  %v2725_v56 = vld [vmem:[#allocation2 + $0x548] sm:$0xf]  ;;  %v3175_v57 = vld [vmem:[#allocation2 + $0x55c] sm:$0xf0]  ;;  %v2534_v60 = vor.u32 %v3127_v55, %v2533_v54  ;;  %v3073_v1 = vld [vmem:[#allocation2 + $0x22c] sm:$0xf0] }
  0x43   :  { %1294 = vmatpush.bf16.msrb.mxu0 %v2098_v46  ;;  %v2174_v46 = vor.u32 %v3037_v38, %v2173_v37  ;;  %v2726_v0 = vor.u32 %v3175_v57, %v2725_v56  ;;  %v3121_v3 = vld [vmem:[#allocation2 + $0x3ac] sm:$0xf0]  ;;  %v2701_v4 = vld [vmem:[#allocation2 + $0x518] sm:$0xf]  ;;  %v2101_v7 = vld [vmem:[#allocation2 + $0x68] sm:$0xf]  ;;  %v2318_v8 = vor.u32 %v3073_v1, %v2317_v63 }
  0x44   :  { %1307 = vmatpush.bf16.msrb.mxu1 %v2290_v47  ;;  %v2366_v47 = vor.u32 %v3085_v41, %v2365_v39  ;;  %v3169_v5 = vld [vmem:[#allocation2 + $0x52c] sm:$0xf0]  ;;  %v3019_v10 = vld [vmem:[#allocation2 + $0x7c] sm:$0xf0]  ;;  %v2293_v11 = vld [vmem:[#allocation2 + $0x1e8] sm:$0xf] }
  0x45   :  { %1320 = vmatpush.bf16.msrb.mxu2 %v2482_v48  ;;  %v2558_v48 = vor.u32 %v3133_v43, %v2557_v42  ;;  %v3067_v12 = vld [vmem:[#allocation2 + $0x1fc] sm:$0xf0]  ;;  %v2677_v16 = vld [vmem:[#allocation2 + $0x4e8] sm:$0xf]  ;;  %v2077_v25 = vld [vmem:[#allocation2 + $0x38] sm:$0xf] }
  0x46   :  { %1333 = vmatpush.bf16.msrb.mxu3 %v2674_v52  ;;  %v2750_v52 = vor.u32 %v3181_v45, %v2749_v44  ;;  %v3115_v15 = vld [vmem:[#allocation2 + $0x37c] sm:$0xf0]  ;;  %v3013_v26 = vld [vmem:[#allocation2 + $0x4c] sm:$0xf0]  ;;  %v2269_v27 = vld [vmem:[#allocation2 + $0x1b8] sm:$0xf] }
  0x47   :  { %1295 = vmatpush.bf16.msrb.mxu0 %v2074_v58  ;;  %v2150_v58 = vor.u32 %v3031_v50, %v2149_v49  ;;  %v3061_v29 = vld [vmem:[#allocation2 + $0x1cc] sm:$0xf0]  ;;  %v2461_v30 = vld [vmem:[#allocation2 + $0x338] sm:$0xf]  ;;  %v2245_v39 = vld [vmem:[#allocation2 + $0x188] sm:$0xf] }
  0x48   :  { %1308 = vmatpush.bf16.msrb.mxu1 %v2266_v61  ;;  %v2125_v61 = vld [vmem:[#allocation2 + $0x98] sm:$0xf]  ;;  %v3109_v31 = vld [vmem:[#allocation2 + $0x34c] sm:$0xf0]  ;;  %v2270_v37 = vor.u32 %v3061_v29, %v2269_v27  ;;  %v2437_v41 = vld [vmem:[#allocation2 + $0x308] sm:$0xf] }
  0x49   :  { %1321 = vmatpush.bf16.msrb.mxu2 %v2458_v62  ;;  %v3025_v62 = vld [vmem:[#allocation2 + $0xac] sm:$0xf0]  ;;  %v2653_v32 = vld [vmem:[#allocation2 + $0x4b8] sm:$0xf]  ;;  %v2462_v38 = vor.u32 %v3109_v31, %v2461_v30  ;;  %v3103_v43 = vld [vmem:[#allocation2 + $0x31c] sm:$0xf0] }
  0x4a   :  { %1334 = vmatpush.bf16.msrb.mxu3 %v2650_v2  ;;  %v2509_v2 = vld [vmem:[#allocation2 + $0x398] sm:$0xf]  ;;  %v2126_v6 = vor.u32 %v3025_v62, %v2125_v61  ;;  %v3157_v33 = vld [vmem:[#allocation2 + $0x4cc] sm:$0xf0]  ;;  %v2629_v44 = vld [vmem:[#allocation2 + $0x488] sm:$0xf]  ;;  %v2438_v54 = vor.u32 %v3103_v43, %v2437_v41 }
  0x4b   :  { %1296 = vmatpush.bf16.msrb.mxu0 %v2050_v9  ;;  %v2510_v9 = vor.u32 %v3121_v3, %v2509_v2  ;;  %v2654_v42 = vor.u32 %v3157_v33, %v2653_v32  ;;  %v3151_v45 = vld [vmem:[#allocation2 + $0x49c] sm:$0xf0]  ;;  %v2415_v50 = vld [vmem:[#allocation2 + $0x2f0] sm:$0xf0]  ;;  %v3142_v51 = vld [vmem:[#allocation2 + $0x45c] sm:$0xf] }
  0x4c   :  { %1309 = vmatpush.bf16.msrb.mxu1 %v2242_v13  ;;  %v2702_v13 = vor.u32 %v3169_v5, %v2701_v4  ;;  %v3190_v55 = vld [vmem:[#allocation2 + $0x5dc] sm:$0xf]  ;;  %v2799_v56 = vld [vmem:[#allocation2 + $0x5f0] sm:$0xf0]  ;;  %v2630_v57 = vor.u32 %v3151_v45, %v2629_v44  ;;  %v3040_v61 = vld [vmem:[#allocation2 + $0x12c] sm:$0xf] }
  0x4d   :  { %1322 = vmatpush.bf16.msrb.mxu2 %v2434_v14  ;;  %v2485_v14 = vld [vmem:[#allocation2 + $0x368] sm:$0xf]  ;;  %v2199_v62 = vld [vmem:[#allocation2 + $0x140] sm:$0xf0]  ;;  %v3088_v63 = vld [vmem:[#allocation2 + $0x2ac] sm:$0xf] }
  0x4e   :  { %1335 = vmatpush.bf16.msrb.mxu3 %v2626_v17  ;;  %1297 = vmatmul.bf16.vlgmr.msrb.gmra.mxu0 %v3358_v19  ;;  %v3163_v17 = vld [vmem:[#allocation2 + $0x4fc] sm:$0xf0]  ;;  %v2391_v1 = vld [vmem:[#allocation2 + $0x2c0] sm:$0xf0]  ;;  %v3136_v2 = vld [vmem:[#allocation2 + $0x42c] sm:$0xf] }
  0x4f   :  { %1341 = vmatpush.bf16.msra.mxu0 %v2222_v21  ;;  %1310 = vmatmul.bf16.vlgmr.msrb.gmra.mxu1 %v3362_v22  ;;  %v2102_v21 = vor.u32 %v3019_v10, %v2101_v7  ;;  %v2583_v3 = vld [vmem:[#allocation2 + $0x440] sm:$0xf0]  ;;  %v3184_v4 = vld [vmem:[#allocation2 + $0x5ac] sm:$0xf]  ;;  %v2394_v7 = vor.u32 %v3088_v63, %v2391_v1  ;;  %v2175_v10 = vld [vmem:[#allocation2 + $0x110] sm:$0xf0] }
  0x50   :  { %1354 = vmatpush.bf16.msra.mxu1 %v2414_v23  ;;  %1323 = vmatmul.bf16.vlgmr.msrb.gmra.mxu2 %v3356_v18  ;;  %v2294_v23 = vor.u32 %v3067_v12, %v2293_v11  ;;  %v2775_v5 = vld [vmem:[#allocation2 + $0x5c0] sm:$0xf0]  ;;  %v3082_v11 = vld [vmem:[#allocation2 + $0x27c] sm:$0xf]  ;;  %v3076_v27 = vld [vmem:[#allocation2 + $0x24c] sm:$0xf] }
  0x51   :  { %1367 = vmatpush.bf16.msra.mxu2 %v2606_v24  ;;  %1336 = vmatmul.bf16.vlgmr.msrb.gmra.mxu3 %v3360_v20  ;;  %v2486_v24 = vor.u32 %v3115_v15, %v2485_v14  ;;  %v2778_v12 = vor.u32 %v3184_v4, %v2775_v5  ;;  %v3130_v14 = vld [vmem:[#allocation2 + $0x3fc] sm:$0xf]  ;;  %v2559_v15 = vld [vmem:[#allocation2 + $0x410] sm:$0xf0]  ;;  %v2343_v29 = vld [vmem:[#allocation2 + $0x260] sm:$0xf0] }
  0x52   :  { %1380 = vmatpush.bf16.msra.mxu3 %v2798_v28  ;;  %v2678_v28 = vor.u32 %v3163_v17, %v2677_v16  ;;  %v3178_v16 = vld [vmem:[#allocation2 + $0x57c] sm:$0xf]  ;;  %v2751_v17 = vld [vmem:[#allocation2 + $0x590] sm:$0xf0]  ;;  %v3124_v30 = vld [vmem:[#allocation2 + $0x3cc] sm:$0xf] }
  0x53   :  { %1342 = vmatpush.bf16.msra.mxu0 %v2198_v34  ;;  %v2078_v34 = vor.u32 %v3013_v26, %v2077_v25  ;;  %v3028_v25 = vld [vmem:[#allocation2 + $0xcc] sm:$0xf]  ;;  %v2151_v26 = vld [vmem:[#allocation2 + $0xe0] sm:$0xf0]  ;;  %v2319_v41 = vld [vmem:[#allocation2 + $0x230] sm:$0xf0] }
  0x54   :  { %1355 = vmatpush.bf16.msra.mxu1 %v2390_v35  ;;  %v2053_v35 = vld [vmem:[#allocation2 + $0x8] sm:$0xf]  ;;  %v2535_v31 = vld [vmem:[#allocation2 + $0x3e0] sm:$0xf0]  ;;  %v3172_v32 = vld [vmem:[#allocation2 + $0x54c] sm:$0xf] }
  0x55   :  { %1368 = vmatpush.bf16.msra.mxu2 %v2582_v36  ;;  %v3007_v36 = vld [vmem:[#allocation2 + $0x1c] sm:$0xf0]  ;;  %v2727_v33 = vld [vmem:[#allocation2 + $0x560] sm:$0xf0]  ;;  %v2511_v43 = vld [vmem:[#allocation2 + $0x3b0] sm:$0xf0] }
  0x56   :  { %1381 = vmatpush.bf16.msra.mxu3 %v2774_v40  ;;  %v3055_v40 = vld [vmem:[#allocation2 + $0x19c] sm:$0xf0]  ;;  %v2054_v49 = vor.u32 %v3007_v36, %v2053_v35  ;;  %v2346_v35 = vor.u32 %v3076_v27, %v2343_v29  ;;  %v2538_v36 = vor.u32 %v3124_v30, %v2535_v31  ;;  %v3166_v44 = vld [vmem:[#allocation2 + $0x51c] sm:$0xf]  ;;  %v2703_v45 = vld [vmem:[#allocation2 + $0x530] sm:$0xf0] }
  0x57   :  { %1343 = vmatpush.bf16.msra.mxu0 %v2174_v46  ;;  %v3046_v46 = vld [vmem:[#allocation2 + $0x15c] sm:$0xf]  ;;  %v2246_v53 = vor.u32 %v3055_v40, %v2245_v39  ;;  %v2730_v40 = vor.u32 %v3172_v32, %v2727_v33  ;;  %v2271_v1 = vld [vmem:[#allocation2 + $0x1d0] sm:$0xf0]  ;;  %v2613_v27 = vld [vmem:[#allocation2 + $0x460] sm:$0xf] }
  0x58   :  { %1356 = vmatpush.bf16.msra.mxu1 %v2366_v47  ;;  %v2223_v47 = vld [vmem:[#allocation2 + $0x170] sm:$0xf0]  ;;  %v3070_v39 = vld [vmem:[#allocation2 + $0x21c] sm:$0xf]  ;;  %v2805_v31 = vld [vmem:[#allocation2 + $0x5e0] sm:$0xf] }
  0x59   :  { %1369 = vmatpush.bf16.msra.mxu2 %v2558_v48  ;;  %v3094_v48 = vld [vmem:[#allocation2 + $0x2dc] sm:$0xf]  ;;  %v2655_v5 = vld [vmem:[#allocation2 + $0x4d0] sm:$0xf0]  ;;  %v3194_v32 = vld [vmem:[#allocation2 + $0x5f4] sm:$0xf0] }
  0x5a   :  { %1382 = vmatpush.bf16.msra.mxu3 %v2750_v52  ;;  %v2607_v52 = vld [vmem:[#allocation2 + $0x470] sm:$0xf0]  ;;  %v3058_v63 = vld [vmem:[#allocation2 + $0x1bc] sm:$0xf] }
  0x5b   :  { %1344 = vmatpush.bf16.msra.mxu0 %v2150_v58  ;;  %v2226_v58 = vor.u32 %v3046_v46, %v2223_v47  ;;  %v2322_v47 = vor.u32 %v3070_v39, %v2319_v41  ;;  %v3154_v4 = vld [vmem:[#allocation2 + $0x4bc] sm:$0xf]  ;;  %v2397_v39 = vld [vmem:[#allocation2 + $0x2b0] sm:$0xf]  ;;  %v3092_v41 = vld [vmem:[#allocation2 + $0x2c4] sm:$0xf0] }
  0x5c   :  { %1357 = vmatpush.bf16.msra.mxu1 %v2342_v59  ;;  %v2418_v59 = vor.u32 %v3094_v48, %v2415_v50  ;;  %v2103_v50 = vld [vmem:[#allocation2 + $0x80] sm:$0xf0] }
  0x5d   :  { %1370 = vmatpush.bf16.msra.mxu2 %v2534_v60  ;;  %v2610_v60 = vor.u32 %v3142_v51, %v2607_v52  ;;  %v3064_v51 = vld [vmem:[#allocation2 + $0x1ec] sm:$0xf]  ;;  %v2706_v52 = vor.u32 %v3166_v44, %v2703_v45  ;;  %v2781_v44 = vld [vmem:[#allocation2 + $0x5b0] sm:$0xf]  ;;  %v3188_v45 = vld [vmem:[#allocation2 + $0x5c4] sm:$0xf0] }
  0x5e   :  { %1383 = vmatpush.bf16.msra.mxu3 %v2726_v0  ;;  %v2802_v0 = vor.u32 %v3190_v55, %v2799_v56  ;;  %v2487_v55 = vld [vmem:[#allocation2 + $0x380] sm:$0xf0]  ;;  %v3160_v56 = vld [vmem:[#allocation2 + $0x4ec] sm:$0xf] }
  0x5f   :  { %1345 = vmatpush.bf16.msra.mxu0 %v2126_v6  ;;  %v2202_v6 = vor.u32 %v3040_v61, %v2199_v62  ;;  %v3010_v61 = vld [vmem:[#allocation2 + $0x3c] sm:$0xf]  ;;  %v2079_v62 = vld [vmem:[#allocation2 + $0x50] sm:$0xf0] }
  0x60   :  { %1358 = vmatpush.bf16.msra.mxu1 %v2318_v8  ;;  %v2586_v8 = vor.u32 %v3136_v2, %v2583_v3  ;;  %v3106_v2 = vld [vmem:[#allocation2 + $0x33c] sm:$0xf]  ;;  %v2463_v3 = vld [vmem:[#allocation2 + $0x350] sm:$0xf0] }
  0x61   :  { %1371 = vmatpush.bf16.msra.mxu2 %v2510_v9  ;;  %v3034_v9 = vld [vmem:[#allocation2 + $0xfc] sm:$0xf] }
  0x62   :  { %1384 = vmatpush.bf16.msra.mxu3 %v2702_v13  ;;  %v2367_v13 = vld [vmem:[#allocation2 + $0x290] sm:$0xf0] }
  0x63   :  { %1346 = vmatpush.bf16.msra.mxu0 %v2102_v21  ;;  %v2178_v21 = vor.u32 %v3034_v9, %v2175_v10  ;;  %v2274_v9 = vor.u32 %v3058_v63, %v2271_v1  ;;  %v2466_v10 = vor.u32 %v3106_v2, %v2463_v3  ;;  %v2349_v63 = vld [vmem:[#allocation2 + $0x250] sm:$0xf]  ;;  %v3080_v1 = vld [vmem:[#allocation2 + $0x264] sm:$0xf0] }
  0x64   :  { %1359 = vmatpush.bf16.msra.mxu1 %v2294_v23  ;;  %v2370_v23 = vor.u32 %v3082_v11, %v2367_v13  ;;  %v3052_v11 = vld [vmem:[#allocation2 + $0x18c] sm:$0xf]  ;;  %v2541_v2 = vld [vmem:[#allocation2 + $0x3d0] sm:$0xf]  ;;  %v3128_v3 = vld [vmem:[#allocation2 + $0x3e4] sm:$0xf0] }
  0x65   :  { %1372 = vmatpush.bf16.msra.mxu2 %v2486_v24  ;;  %v2562_v24 = vor.u32 %v3130_v14, %v2559_v15  ;;  %v3100_v13 = vld [vmem:[#allocation2 + $0x30c] sm:$0xf]  ;;  %v2658_v14 = vor.u32 %v3154_v4, %v2655_v5  ;;  %v2439_v15 = vld [vmem:[#allocation2 + $0x320] sm:$0xf0]  ;;  %v2733_v4 = vld [vmem:[#allocation2 + $0x550] sm:$0xf] }
  0x66   :  { %1385 = vmatpush.bf16.msra.mxu3 %v2678_v28  ;;  %v2754_v28 = vor.u32 %v3178_v16, %v2751_v17  ;;  %v3148_v16 = vld [vmem:[#allocation2 + $0x48c] sm:$0xf]  ;;  %v2631_v17 = vld [vmem:[#allocation2 + $0x4a0] sm:$0xf0]  ;;  %v2442_v30 = vor.u32 %v3100_v13, %v2439_v15  ;;  %v3176_v5 = vld [vmem:[#allocation2 + $0x564] sm:$0xf0] }
  0x67   :  { %1347 = vmatpush.bf16.msra.mxu0 %v2078_v34  ;;  %v2154_v34 = vor.u32 %v3028_v25, %v2151_v26  ;;  %v3098_v26 = vld [vmem:[#allocation2 + $0x2f4] sm:$0xf0]  ;;  %v2634_v33 = vor.u32 %v3148_v16, %v2631_v17  ;;  %v2709_v16 = vld [vmem:[#allocation2 + $0x520] sm:$0xf] }
  0x68   :  { %1360 = vmatpush.bf16.msra.mxu1 %v2270_v37  ;;  %v3022_v37 = vld [vmem:[#allocation2 + $0x9c] sm:$0xf]  ;;  %v3074_v13 = vld [vmem:[#allocation2 + $0x234] sm:$0xf0] }
  0x69   :  { %1373 = vmatpush.bf16.msra.mxu2 %v2462_v38  ;;  %v2127_v38 = vld [vmem:[#allocation2 + $0xb0] sm:$0xf0]  ;;  %v3122_v15 = vld [vmem:[#allocation2 + $0x3b4] sm:$0xf0] }
  0x6a   :  { %1386 = vmatpush.bf16.msra.mxu3 %v2654_v42  ;;  %v3118_v42 = vld [vmem:[#allocation2 + $0x39c] sm:$0xf]  ;;  %v2130_v46 = vor.u32 %v3022_v37, %v2127_v38  ;;  %v2205_v37 = vld [vmem:[#allocation2 + $0x130] sm:$0xf]  ;;  %v3044_v38 = vld [vmem:[#allocation2 + $0x144] sm:$0xf0] }
  0x6b   :  { %1348 = vmatpush.bf16.msra.mxu0 %v2054_v49  ;;  %v2514_v48 = vor.u32 %v3118_v42, %v2511_v43  ;;  %v3016_v49 = vld [vmem:[#allocation2 + $0x6c] sm:$0xf]  ;;  %v2589_v42 = vld [vmem:[#allocation2 + $0x430] sm:$0xf]  ;;  %v3140_v43 = vld [vmem:[#allocation2 + $0x444] sm:$0xf0] }
  0x6c   :  { %1361 = vmatpush.bf16.msra.mxu1 %v2246_v53  ;;  %v2295_v53 = vld [vmem:[#allocation2 + $0x200] sm:$0xf0]  ;;  %v3170_v17 = vld [vmem:[#allocation2 + $0x534] sm:$0xf0] }
  0x6d   :  { %1374 = vmatpush.bf16.msra.mxu2 %v2438_v54  ;;  %v3112_v54 = vld [vmem:[#allocation2 + $0x36c] sm:$0xf] }
  0x6e   :  { %1387 = vmatpush.bf16.msra.mxu3 %v2630_v57  ;;  %1349 = vmatmul.bf16.vlgmr.msra.gmra.mxu0 %v3358_v19  ;;  %v2679_v57 = vld [vmem:[#allocation2 + $0x500] sm:$0xf0] }
  0x6f   :  { %1393 = vmatpush.bf16.msrb.mxu0 %v2226_v58  ;;  %1362 = vmatmul.bf16.vlgmr.msra.gmra.mxu1 %v3362_v22  ;;  %v2106_v58 = vor.u32 %v3016_v49, %v2103_v50  ;;  %v2181_v49 = vld [vmem:[#allocation2 + $0x100] sm:$0xf]  ;;  %v3038_v50 = vld [vmem:[#allocation2 + $0x114] sm:$0xf0] }
  0x70   :  { %1406 = vmatpush.bf16.msrb.mxu1 %v2418_v59  ;;  %1375 = vmatmul.bf16.vlgmr.msra.gmra.mxu2 %v3356_v18  ;;  %v2298_v59 = vor.u32 %v3064_v51, %v2295_v53  ;;  %v2373_v51 = vld [vmem:[#allocation2 + $0x280] sm:$0xf]  ;;  %v3086_v53 = vld [vmem:[#allocation2 + $0x294] sm:$0xf0] }
  0x71   :  { %1419 = vmatpush.bf16.msrb.mxu2 %v2610_v60  ;;  %1388 = vmatmul.bf16.vlgmr.msra.gmra.mxu3 %v3360_v20  ;;  %v2490_v60 = vor.u32 %v3112_v54, %v2487_v55  ;;  %v2565_v54 = vld [vmem:[#allocation2 + $0x400] sm:$0xf]  ;;  %v3134_v55 = vld [vmem:[#allocation2 + $0x414] sm:$0xf0] }
  0x72   :  { %1432 = vmatpush.bf16.msrb.mxu3 %v2802_v0  ;;  %v2682_v0 = vor.u32 %v3160_v56, %v2679_v57  ;;  %v2757_v56 = vld [vmem:[#allocation2 + $0x580] sm:$0xf]  ;;  %v3182_v57 = vld [vmem:[#allocation2 + $0x594] sm:$0xf0] }
  0x73   :  { %1394 = vmatpush.bf16.msrb.mxu0 %v2202_v6  ;;  %v2082_v6 = vor.u32 %v3010_v61, %v2079_v62  ;;  %v2157_v61 = vld [vmem:[#allocation2 + $0xd0] sm:$0xf]  ;;  %v3032_v62 = vld [vmem:[#allocation2 + $0xe4] sm:$0xf0] }
  0x74   :  { %1407 = vmatpush.bf16.msrb.mxu1 %v2394_v7  ;;  %v3004_v7 = vld [vmem:[#allocation2 + $0xc] sm:$0xf] }
  0x75   :  { %1420 = vmatpush.bf16.msrb.mxu2 %v2586_v8  ;;  %v2055_v8 = vld [vmem:[#allocation2 + $0x20] sm:$0xf0] }
  0x76   :  { %1433 = vmatpush.bf16.msrb.mxu3 %v2778_v12  ;;  %v2247_v12 = vld [vmem:[#allocation2 + $0x1a0] sm:$0xf0]  ;;  %v2058_v25 = vor.u32 %v3004_v7, %v2055_v8  ;;  %v2350_v7 = vor.u32 %v3080_v1, %v2349_v63  ;;  %v2542_v8 = vor.u32 %v3128_v3, %v2541_v2 }
  0x77   :  { %1395 = vmatpush.bf16.msrb.mxu0 %v2178_v21  ;;  %v2229_v21 = vld [vmem:[#allocation2 + $0x160] sm:$0xf]  ;;  %v2250_v29 = vor.u32 %v3052_v11, %v2247_v12  ;;  %v2734_v12 = vor.u32 %v3176_v5, %v2733_v4  ;;  %v3143_v63 = vld [vmem:[#allocation2 + $0x464] sm:$0xf]  ;;  %v2807_v4 = vld [vmem:[#allocation2 + $0x5f8] sm:$0xf0] }
  0x78   :  { %1408 = vmatpush.bf16.msrb.mxu1 %v2370_v23  ;;  %v3050_v23 = vld [vmem:[#allocation2 + $0x174] sm:$0xf0]  ;;  %v2325_v11 = vld [vmem:[#allocation2 + $0x220] sm:$0xf]  ;;  %v3191_v3 = vld [vmem:[#allocation2 + $0x5e4] sm:$0xf] }
  0x79   :  { %1421 = vmatpush.bf16.msrb.mxu2 %v2562_v24  ;;  %v2421_v24 = vld [vmem:[#allocation2 + $0x2e0] sm:$0xf] }
  0x7a   :  { %1434 = vmatpush.bf16.msrb.mxu3 %v2754_v28  ;;  %v3146_v28 = vld [vmem:[#allocation2 + $0x474] sm:$0xf0] }
  0x7b   :  { %1396 = vmatpush.bf16.msrb.mxu0 %v2154_v34  ;;  %v2230_v34 = vor.u32 %v3050_v23, %v2229_v21  ;;  %v2326_v23 = vor.u32 %v3074_v13, %v2325_v11  ;;  %v3089_v11 = vld [vmem:[#allocation2 + $0x2b4] sm:$0xf]  ;;  %v2399_v13 = vld [vmem:[#allocation2 + $0x2c8] sm:$0xf0] }
  0x7c   :  { %1409 = vmatpush.bf16.msrb.mxu1 %v2346_v35  ;;  %v2422_v35 = vor.u32 %v3098_v26, %v2421_v24  ;;  %v3020_v26 = vld [vmem:[#allocation2 + $0x84] sm:$0xf0] }
  0x7d   :  { %1422 = vmatpush.bf16.msrb.mxu2 %v2538_v36  ;;  %v2614_v36 = vor.u32 %v3146_v28, %v2613_v27  ;;  %v2301_v27 = vld [vmem:[#allocation2 + $0x1f0] sm:$0xf]  ;;  %v2710_v28 = vor.u32 %v3170_v17, %v2709_v16  ;;  %v3185_v16 = vld [vmem:[#allocation2 + $0x5b4] sm:$0xf]  ;;  %v2783_v17 = vld [vmem:[#allocation2 + $0x5c8] sm:$0xf0] }
  0x7e   :  { %1435 = vmatpush.bf16.msrb.mxu3 %v2730_v40  ;;  %v2806_v40 = vor.u32 %v3194_v32, %v2805_v31  ;;  %v3116_v31 = vld [vmem:[#allocation2 + $0x384] sm:$0xf0]  ;;  %v2685_v32 = vld [vmem:[#allocation2 + $0x4f0] sm:$0xf] }
  0x7f   :  { %1397 = vmatpush.bf16.msrb.mxu0 %v2130_v46  ;;  %v2206_v46 = vor.u32 %v3044_v38, %v2205_v37  ;;  %v2085_v37 = vld [vmem:[#allocation2 + $0x40] sm:$0xf]  ;;  %v3014_v38 = vld [vmem:[#allocation2 + $0x54] sm:$0xf0] }
  0x80   :  { %1410 = vmatpush.bf16.msrb.mxu1 %v2322_v47  ;;  %v2398_v47 = vor.u32 %v3092_v41, %v2397_v39  ;;  %v2277_v39 = vld [vmem:[#allocation2 + $0x1c0] sm:$0xf]  ;;  %v3062_v41 = vld [vmem:[#allocation2 + $0x1d4] sm:$0xf0] }
  0x81   :  { %1423 = vmatpush.bf16.msrb.mxu2 %v2514_v48  ;;  %v2590_v48 = vor.u32 %v3140_v43, %v2589_v42  ;;  %v2469_v42 = vld [vmem:[#allocation2 + $0x340] sm:$0xf]  ;;  %v3110_v43 = vld [vmem:[#allocation2 + $0x354] sm:$0xf0] }
  0x82   :  { %1436 = vmatpush.bf16.msrb.mxu3 %v2706_v52  ;;  %v2782_v52 = vor.u32 %v3188_v45, %v2781_v44  ;;  %v2661_v44 = vld [vmem:[#allocation2 + $0x4c0] sm:$0xf]  ;;  %v3158_v45 = vld [vmem:[#allocation2 + $0x4d4] sm:$0xf0] }
  0x83   :  { %1398 = vmatpush.bf16.msrb.mxu0 %v2106_v58  ;;  %v2182_v58 = vor.u32 %v3038_v50, %v2181_v49  ;;  %v2278_v49 = vor.u32 %v3062_v41, %v2277_v39  ;;  %v2470_v50 = vor.u32 %v3110_v43, %v2469_v42  ;;  %v3077_v39 = vld [vmem:[#allocation2 + $0x254] sm:$0xf]  ;;  %v2351_v41 = vld [vmem:[#allocation2 + $0x268] sm:$0xf0] }
  0x84   :  { %1411 = vmatpush.bf16.msrb.mxu1 %v2298_v59  ;;  %v2374_v59 = vor.u32 %v3086_v53, %v2373_v51  ;;  %v2253_v51 = vld [vmem:[#allocation2 + $0x190] sm:$0xf]  ;;  %v3125_v42 = vld [vmem:[#allocation2 + $0x3d4] sm:$0xf]  ;;  %v2543_v43 = vld [vmem:[#allocation2 + $0x3e8] sm:$0xf0] }
  0x85   :  { %1424 = vmatpush.bf16.msrb.mxu2 %v2490_v60  ;;  %v2566_v60 = vor.u32 %v3134_v55, %v2565_v54  ;;  %v2445_v53 = vld [vmem:[#allocation2 + $0x310] sm:$0xf]  ;;  %v2662_v54 = vor.u32 %v3158_v45, %v2661_v44  ;;  %v3104_v55 = vld [vmem:[#allocation2 + $0x324] sm:$0xf0]  ;;  %v3173_v44 = vld [vmem:[#allocation2 + $0x554] sm:$0xf] }
  0x86   :  { %1437 = vmatpush.bf16.msrb.mxu3 %v2682_v0  ;;  %v2758_v0 = vor.u32 %v3182_v57, %v2757_v56  ;;  %v2637_v56 = vld [vmem:[#allocation2 + $0x490] sm:$0xf]  ;;  %v3152_v57 = vld [vmem:[#allocation2 + $0x4a4] sm:$0xf0]  ;;  %v2446_v2 = vor.u32 %v3104_v55, %v2445_v53  ;;  %v2735_v45 = vld [vmem:[#allocation2 + $0x568] sm:$0xf0] }
  0x87   :  { %1399 = vmatpush.bf16.msrb.mxu0 %v2082_v6  ;;  %v2158_v6 = vor.u32 %v3032_v62, %v2157_v61  ;;  %v2423_v62 = vld [vmem:[#allocation2 + $0x2f8] sm:$0xf0]  ;;  %v2638_v5 = vor.u32 %v3152_v57, %v2637_v56  ;;  %v3167_v56 = vld [vmem:[#allocation2 + $0x524] sm:$0xf] }
  0x88   :  { %1412 = vmatpush.bf16.msrb.mxu1 %v2274_v9  ;;  %v2133_v9 = vld [vmem:[#allocation2 + $0xa0] sm:$0xf]  ;;  %v2327_v53 = vld [vmem:[#allocation2 + $0x238] sm:$0xf0] }
  0x89   :  { %1425 = vmatpush.bf16.msrb.mxu2 %v2466_v10  ;;  %v3026_v10 = vld [vmem:[#allocation2 + $0xb4] sm:$0xf0]  ;;  %v2519_v55 = vld [vmem:[#allocation2 + $0x3b8] sm:$0xf0] }
  0x8a   :  { %1438 = vmatpush.bf16.msrb.mxu3 %v2658_v14  ;;  %v2517_v14 = vld [vmem:[#allocation2 + $0x3a0] sm:$0xf]  ;;  %v2134_v21 = vor.u32 %v3026_v10, %v2133_v9  ;;  %v3041_v9 = vld [vmem:[#allocation2 + $0x134] sm:$0xf]  ;;  %v2207_v10 = vld [vmem:[#allocation2 + $0x148] sm:$0xf0] }
  0x8b   :  { %1400 = vmatpush.bf16.msrb.mxu0 %v2058_v25  ;;  %v2518_v24 = vor.u32 %v3122_v15, %v2517_v14  ;;  %v2109_v25 = vld [vmem:[#allocation2 + $0x70] sm:$0xf]  ;;  %v3137_v14 = vld [vmem:[#allocation2 + $0x434] sm:$0xf]  ;;  %v2591_v15 = vld [vmem:[#allocation2 + $0x448] sm:$0xf0] }
  0x8c   :  { %1413 = vmatpush.bf16.msrb.mxu1 %v2250_v29  ;;  %v3068_v29 = vld [vmem:[#allocation2 + $0x204] sm:$0xf0]  ;;  %v2711_v57 = vld [vmem:[#allocation2 + $0x538] sm:$0xf0] }
  0x8d   :  { %1426 = vmatpush.bf16.msrb.mxu2 %v2442_v30  ;;  %v2493_v30 = vld [vmem:[#allocation2 + $0x370] sm:$0xf] }
  0x8e   :  { %1439 = vmatpush.bf16.msrb.mxu3 %v2634_v33  ;;  %1401 = vmatmul.bf16.vlgmr.msrb.gmra.mxu0 %v3358_v19  ;;  %v3164_v33 = vld [vmem:[#allocation2 + $0x504] sm:$0xf0] }
  0x8f   :  { %1445 = vmatpush.bf16.msra.mxu0 %v2230_v34  ;;  %1414 = vmatmul.bf16.vlgmr.msrb.gmra.mxu1 %v3362_v22  ;;  %v2110_v34 = vor.u32 %v3020_v26, %v2109_v25  ;;  %v3035_v25 = vld [vmem:[#allocation2 + $0x104] sm:$0xf]  ;;  %v2183_v26 = vld [vmem:[#allocation2 + $0x118] sm:$0xf0] }
  0x90   :  { %1458 = vmatpush.bf16.msra.mxu1 %v2422_v35  ;;  %1427 = vmatmul.bf16.vlgmr.msrb.gmra.mxu2 %v3356_v18  ;;  %v2302_v35 = vor.u32 %v3068_v29, %v2301_v27  ;;  %v3083_v27 = vld [vmem:[#allocation2 + $0x284] sm:$0xf]  ;;  %v2375_v29 = vld [vmem:[#allocation2 + $0x298] sm:$0xf0] }
  0x91   :  { %1471 = vmatpush.bf16.msra.mxu2 %v2614_v36  ;;  %1440 = vmatmul.bf16.vlgmr.msrb.gmra.mxu3 %v3360_v20  ;;  %v2494_v36 = vor.u32 %v3116_v31, %v2493_v30  ;;  %v3131_v30 = vld [vmem:[#allocation2 + $0x404] sm:$0xf]  ;;  %v2567_v31 = vld [vmem:[#allocation2 + $0x418] sm:$0xf0] }
  0x92   :  { %1484 = vmatpush.bf16.msra.mxu3 %v2806_v40  ;;  %v2686_v40 = vor.u32 %v3164_v33, %v2685_v32  ;;  %v3179_v32 = vld [vmem:[#allocation2 + $0x584] sm:$0xf]  ;;  %v2759_v33 = vld [vmem:[#allocation2 + $0x598] sm:$0xf0] }
  0x93   :  { %1446 = vmatpush.bf16.msra.mxu0 %v2206_v46  ;;  %v2086_v46 = vor.u32 %v3014_v38, %v2085_v37  ;;  %v3029_v37 = vld [vmem:[#allocation2 + $0xd4] sm:$0xf]  ;;  %v2159_v38 = vld [vmem:[#allocation2 + $0xe8] sm:$0xf0] }
  0x94   :  { %1459 = vmatpush.bf16.msra.mxu1 %v2398_v47  ;;  %v2061_v47 = vld [vmem:[#allocation2 + $0x10] sm:$0xf] }
  0x95   :  { %1472 = vmatpush.bf16.msra.mxu2 %v2590_v48  ;;  %v3008_v48 = vld [vmem:[#allocation2 + $0x24] sm:$0xf0] }
  0x96   :  { %1485 = vmatpush.bf16.msra.mxu3 %v2782_v52  ;;  %v3056_v52 = vld [vmem:[#allocation2 + $0x1a4] sm:$0xf0]  ;;  %v2062_v61 = vor.u32 %v3008_v48, %v2061_v47  ;;  %v2354_v47 = vor.u32 %v3077_v39, %v2351_v41  ;;  %v2546_v48 = vor.u32 %v3125_v42, %v2543_v43 }
  0x97   :  { %1447 = vmatpush.bf16.msra.mxu0 %v2182_v58  ;;  %v3047_v58 = vld [vmem:[#allocation2 + $0x164] sm:$0xf]  ;;  %v2254_v1 = vor.u32 %v3056_v52, %v2253_v51  ;;  %v2738_v52 = vor.u32 %v3173_v44, %v2735_v45  ;;  %v3202_v44 = vld [vmem:[#allocation4 + $0x38] sm:$0xff] }
  0x98   :  { %1460 = vmatpush.bf16.msra.mxu1 %v2374_v59  ;;  %v2231_v59 = vld [vmem:[#allocation2 + $0x178] sm:$0xf0]  ;;  %v3071_v51 = vld [vmem:[#allocation2 + $0x224] sm:$0xf] }
  0x99   :  { %1473 = vmatpush.bf16.msra.mxu2 %v2566_v60  ;;  %v3095_v60 = vld [vmem:[#allocation2 + $0x2e4] sm:$0xf]  ;;  %v3210_v45 = vld [vmem:[#allocation4 + $0x78] sm:$0xff] }
  0x9a   :  { %1486 = vmatpush.bf16.msra.mxu3 %v2758_v0  ;;  %v2615_v0 = vld [vmem:[#allocation2 + $0x478] sm:$0xf0] }
  0x9b   :  { %1448 = vmatpush.bf16.msra.mxu0 %v2158_v6  ;;  %v2234_v6 = vor.u32 %v3047_v58, %v2231_v59  ;;  %v2330_v59 = vor.u32 %v3071_v51, %v2327_v53  ;;  %v3398_v51 = vld [vmem:[%s3422_s2] sm:$0x3f]  ;;  %v3200_v53 = vld [vmem:[#allocation4 + $0x28] sm:$0xff] }
  0x9c   :  { %1461 = vmatpush.bf16.msra.mxu1 %v2350_v7  ;;  %v2426_v7 = vor.u32 %v3095_v60, %v2423_v62  ;;  %v2111_v62 = vld [vmem:[#allocation2 + $0x88] sm:$0xf0] }
  0x9d   :  { %1474 = vmatpush.bf16.msra.mxu2 %v2542_v8  ;;  %v2618_v8 = vor.u32 %v3143_v63, %v2615_v0  ;;  %v3065_v63 = vld [vmem:[#allocation2 + $0x1f4] sm:$0xf]  ;;  %v2714_v0 = vor.u32 %v3167_v56, %v2711_v57 }
  0x9e   :  { %1487 = vmatpush.bf16.msra.mxu3 %v2734_v12  ;;  %v2810_v12 = vor.u32 %v3191_v3, %v2807_v4  ;;  %v2495_v3 = vld [vmem:[#allocation2 + $0x388] sm:$0xf0]  ;;  %v3161_v4 = vld [vmem:[#allocation2 + $0x4f4] sm:$0xf] }
  0x9f   :  { %1449 = vmatpush.bf16.msra.mxu0 %v2134_v21  ;;  %v2210_v21 = vor.u32 %v3041_v9, %v2207_v10  ;;  %v3011_v10 = vld [vmem:[#allocation2 + $0x44] sm:$0xf] }
  0xa0   :  { %1462 = vmatpush.bf16.msra.mxu1 %v2326_v23  ;;  %v2402_v23 = vor.u32 %v3089_v11, %v2399_v13  ;;  %v2087_v11 = vld [vmem:[#allocation2 + $0x58] sm:$0xf0] }
  0xa1   :  { %1475 = vmatpush.bf16.msra.mxu2 %v2518_v24  ;;  %v2594_v24 = vor.u32 %v3137_v14, %v2591_v15  ;;  %v2279_v15 = vld [vmem:[#allocation2 + $0x1d8] sm:$0xf0] }
  0xa2   :  { %1488 = vmatpush.bf16.msra.mxu3 %v2710_v28  ;;  %v2786_v28 = vor.u32 %v3185_v16, %v2783_v17  ;;  %v3107_v16 = vld [vmem:[#allocation2 + $0x344] sm:$0xf]  ;;  %v2471_v17 = vld [vmem:[#allocation2 + $0x358] sm:$0xf0] }
  0xa3   :  { %1450 = vmatpush.bf16.msra.mxu0 %v2110_v34  ;;  %v2186_v34 = vor.u32 %v3035_v25, %v2183_v26  ;;  %v2474_v26 = vor.u32 %v3107_v16, %v2471_v17  ;;  %v3204_v16 = vld [vmem:[#allocation4 + $0x48] sm:$0xff] }
  0xa4   :  { %1463 = vmatpush.bf16.msra.mxu1 %v2302_v35  ;;  %v2378_v35 = vor.u32 %v3083_v27, %v2375_v29  ;;  %v3005_v27 = vld [vmem:[#allocation2 + $0x14] sm:$0xf] }
  0xa5   :  { %1476 = vmatpush.bf16.msra.mxu2 %v2494_v36  ;;  %v2570_v36 = vor.u32 %v3131_v30, %v2567_v31  ;;  %v3053_v29 = vld [vmem:[#allocation2 + $0x194] sm:$0xf] }
  0xa6   :  { %1489 = vmatpush.bf16.msra.mxu3 %v2686_v40  ;;  %v2762_v40 = vor.u32 %v3179_v32, %v2759_v33  ;;  %v2255_v32 = vld [vmem:[#allocation2 + $0x1a8] sm:$0xf0]  ;;  %v3101_v33 = vld [vmem:[#allocation2 + $0x314] sm:$0xf] }
  0xa7   :  { %1451 = vmatpush.bf16.msra.mxu0 %v2086_v46  ;;  %v2162_v46 = vor.u32 %v3029_v37, %v2159_v38  ;;  %v2639_v37 = vld [vmem:[#allocation2 + $0x4a8] sm:$0xf0] }
  0xa8   :  { %1464 = vmatpush.bf16.msra.mxu1 %v2278_v49  ;;  %v3023_v49 = vld [vmem:[#allocation2 + $0xa4] sm:$0xf] }
  0xa9   :  { %1477 = vmatpush.bf16.msra.mxu2 %v2470_v50  ;;  %v2135_v50 = vld [vmem:[#allocation2 + $0xb8] sm:$0xf0] }
  0xaa   :  { %1490 = vmatpush.bf16.msra.mxu3 %v2662_v54  ;;  %v3119_v54 = vld [vmem:[#allocation2 + $0x3a4] sm:$0xf]  ;;  %v2138_v58 = vor.u32 %v3023_v49, %v2135_v50  ;;  %v3209_v50 = vld [vmem:[#allocation4 + $0x70] sm:$0xff] }
  0xab   :  { %1452 = vmatpush.bf16.msra.mxu0 %v2062_v61  ;;  %v2522_v60 = vor.u32 %v3119_v54, %v2519_v55  ;;  %v3017_v61 = vld [vmem:[#allocation2 + $0x74] sm:$0xf]  ;;  %v251_v54 = vperm.slane %v3398_v51, 0  ;;  %v252_v55 = vperm.slane %v3398_v51, 1 }
  0xac   :  { %1465 = vmatpush.bf16.msra.mxu1 %v2254_v1  ;;  %v2303_v1 = vld [vmem:[#allocation2 + $0x208] sm:$0xf0]  ;;  %v3386_v13 = vpop.f32.mrf.mxu1 }
  0xad   :  { %1478 = vmatpush.bf16.msra.mxu2 %v2446_v2  ;;  %v3113_v2 = vld [vmem:[#allocation2 + $0x374] sm:$0xf] }
  0xae   :  { %1491 = vmatpush.bf16.msra.mxu3 %v2638_v5  ;;  %1453 = vmatmul.bf16.vlgmr.msra.gmra.mxu0 %v3358_v19  ;;  %v2687_v5 = vld [vmem:[#allocation2 + $0x508] sm:$0xf0]  ;;  %v2498_v9 = vor.u32 %v3113_v2, %v2495_v3  ;;  %v3214_v3 = vld [vmem:[#allocation4 + $0x98] sm:$0xff] }
  0xaf   :  { %1497 = vmatpush.bf16.msrb.mxu0 %v2234_v6  ;;  %1466 = vmatmul.bf16.vlgmr.msra.gmra.mxu1 %v3362_v22  ;;  %v2114_v6 = vor.u32 %v3017_v61, %v2111_v62  ;;  %v2690_v14 = vor.u32 %v3161_v4, %v2687_v5  ;;  %v3198_v61 = vld [vmem:[#allocation4 + $0x18] sm:$0xff]  ;;  %v3197_v4 = vld [vmem:[#allocation4 + $0x10] sm:$0xff] }
  0xb0   :  { %1510 = vmatpush.bf16.msrb.mxu1 %v2426_v7  ;;  %1479 = vmatmul.bf16.vlgmr.msra.gmra.mxu2 %v3356_v18  ;;  %v3384_v7 = vpop.f32.mrf.mxu0 }
  0xb1   :  { %1523 = vmatpush.bf16.msrb.mxu2 %v2618_v8  ;;  %1492 = vmatmul.bf16.vlgmr.msra.gmra.mxu3 %v3360_v20  ;;  %v2306_v8 = vor.u32 %v3065_v63, %v2303_v1  ;;  %v1247_v57 = vadd.f32 %v3384_v7, %v251_v54 }
  0xb2   :  { %1536 = vmatpush.bf16.msrb.mxu3 %v2810_v12  ;;  %v3059_v12 = vld [vmem:[#allocation2 + $0x1c4] sm:$0xf] }
  0xb3   :  { %1498 = vmatpush.bf16.msrb.mxu0 %v2210_v21  ;;  %v3155_v21 = vld [vmem:[#allocation2 + $0x4c4] sm:$0xf]  ;;  %v2282_v25 = vor.u32 %v3059_v12, %v2279_v15  ;;  %v3388_v30 = vpop.f32.mrf.mxu2  ;;  %v1260_v63 = vadd.f32 %v3386_v13, %v1247_v57  ;;  %v3196_v12 = vld [vmem:[#allocation4 + $0x8] sm:$0xff] }
  0xb4   :  { %1511 = vmatpush.bf16.msrb.mxu1 %v2402_v23  ;;  %v2663_v23 = vld [vmem:[#allocation2 + $0x4d8] sm:$0xf0]  ;;  %v1261_v42 = vpop.f32.mrf.mxu1 }
  0xb5   :  { %1524 = vmatpush.bf16.msrb.mxu2 %v2594_v24  ;;  %v2090_v24 = vor.u32 %v3011_v10, %v2087_v11  ;;  %v2666_v31 = vor.u32 %v3155_v21, %v2663_v23  ;;  %v1273_v7 = vadd.f32 %v3388_v30, %v1260_v63  ;;  %v3226_v10 = vld [vmem:[#allocation4 + $0xf8] sm:$0xff]  ;;  %v3213_v11 = vld [vmem:[#allocation4 + $0x90] sm:$0xff]  ;;  %v3212_v23 = vld [vmem:[#allocation4 + $0x88] sm:$0xff] }
  0xb6   :  { %1537 = vmatpush.bf16.msrb.mxu3 %v2786_v28  ;;  %v2063_v28 = vld [vmem:[#allocation2 + $0x28] sm:$0xf0] }
  0xb7   :  { %1499 = vmatpush.bf16.msrb.mxu0 %v2186_v34  ;;  %v2447_v34 = vld [vmem:[#allocation2 + $0x328] sm:$0xf0]  ;;  %v2066_v38 = vor.u32 %v3005_v27, %v2063_v28  ;;  %v3203_v28 = vld [vmem:[#allocation4 + $0x40] sm:$0xff] }
  0xb8   :  { %1512 = vmatpush.bf16.msrb.mxu1 %v2378_v35  ;;  %v3390_v35 = vpop.f32.mrf.mxu3  ;;  %v1248_v39 = vpop.f32.mrf.mxu0  ;;  %v2450_v41 = vor.u32 %v3101_v33, %v2447_v34  ;;  %v3222_v33 = vld [vmem:[#allocation4 + $0xd8] sm:$0xff]  ;;  %v253_v34 = vperm.slane %v3398_v51, 2 }
  0xb9   :  { %1525 = vmatpush.bf16.msrb.mxu2 %v2570_v36  ;;  %v3149_v36 = vld [vmem:[#allocation2 + $0x494] sm:$0xf]  ;;  %v1286_v15 = vadd.f32 %v3390_v35, %v1273_v7 }
  0xba   :  { %1538 = vmatpush.bf16.msrb.mxu3 %v2762_v40  ;;  %v2258_v40 = vor.u32 %v3053_v29, %v2255_v32  ;;  %v2642_v43 = vor.u32 %v3149_v36, %v2639_v37  ;;  %v3211_v29 = vld [vmem:[#allocation4 + $0x80] sm:$0xff]  ;;  %v3241_v7 = vld [vmem:[#allocation4 + $0x170] sm:$0xff] }
  0xbb   :  { %1500 = vmatpush.bf16.msrb.mxu0 %v2162_v46  ;;  %v1274_v46 = vpop.f32.mrf.mxu2  ;;  %v1549_v27 = vmax.f32 %v1286_v15, 0.0 }
  0xbc   :  { %1513 = vmatpush.bf16.msrb.mxu1 %v2354_v47  ;;  %v3218_v47 = vld [vmem:[#allocation4 + $0xb8] sm:$0xff] }
  0xbd   :  { %1526 = vmatpush.bf16.msrb.mxu2 %v2546_v48  ;;  %v3201_v48 = vld [vmem:[#allocation4 + $0x30] sm:$0xff]  ;;  %v1555_v32 = vpack.c.bf16 %v1549_v27, %v1549_v27 }
  0xbe   :  { %1539 = vmatpush.bf16.msrb.mxu3 %v2738_v52  ;;  %v3217_v52 = vld [vmem:[#allocation4 + $0xb0] sm:$0xff] }
  0xbf   :  { %1501 = vmatpush.bf16.msrb.mxu0 %v2138_v58  ;;  %v3207_v58 = vld [vmem:[#allocation4 + $0x60] sm:$0xff] }
  0xc0   :  { %1514 = vmatpush.bf16.msrb.mxu1 %v2330_v59  ;;  %v1287_v49 = vpop.f32.mrf.mxu3 }
  0xc1   :  { %1527 = vmatpush.bf16.msrb.mxu2 %v2522_v60  ;;  %v3215_v60 = vld [vmem:[#allocation4 + $0xa0] sm:$0xff]  ;;  %v3234_v49 = vld [vmem:[#allocation4 + $0x138] sm:$0xff] }
  0xc2   :  { %1540 = vmatpush.bf16.msrb.mxu3 %v2714_v0  ;;  %v3206_v0 = vld [vmem:[#allocation4 + $0x58] sm:$0xff] }
  0xc3   :  { %1502 = vmatpush.bf16.msrb.mxu0 %v2114_v6 }
  0xc4   :  { %1515 = vmatpush.bf16.msrb.mxu1 %v2306_v8  ;;  %v3205_v8 = vld [vmem:[#allocation4 + $0x50] sm:$0xff] }
  0xc5   :  { %1528 = vmatpush.bf16.msrb.mxu2 %v2498_v9 }
  0xc6   :  { %1541 = vmatpush.bf16.msrb.mxu3 %v2690_v14  ;;  %v3225_v14 = vld [vmem:[#allocation4 + $0xf0] sm:$0xff] }
  0xc7   :  { %1503 = vmatpush.bf16.msrb.mxu0 %v2090_v24 }
  0xc8   :  { %1516 = vmatpush.bf16.msrb.mxu1 %v2282_v25  ;;  %v3195_v25 = vld [vmem:[#allocation4] sm:$0xff] }
  0xc9   :  { %1529 = vmatpush.bf16.msrb.mxu2 %v2474_v26  ;;  %v3224_v26 = vld [vmem:[#allocation4 + $0xe8] sm:$0xff] }
  0xca   :  { %1542 = vmatpush.bf16.msrb.mxu3 %v2666_v31  ;;  %v3223_v31 = vld [vmem:[#allocation4 + $0xe0] sm:$0xff] }
  0xcb   :  { %1504 = vmatpush.bf16.msrb.mxu0 %v2066_v38  ;;  %v1298_v56 = vpop.f32.mrf.mxu0  ;;  %v3221_v38 = vld [vmem:[#allocation4 + $0xd0] sm:$0xff] }
  0xcc   :  { %1517 = vmatpush.bf16.msrb.mxu1 %v2258_v40  ;;  %v1311_v59 = vpop.f32.mrf.mxu1 }
  0xcd   :  { %1530 = vmatpush.bf16.msrb.mxu2 %v2450_v41 }
  0xce   :  { %1543 = vmatpush.bf16.msrb.mxu3 %v2642_v43  ;;  %1505 = vmatmul.bf16.vlgmr.msrb.gmra.mxu0 %v3358_v19  ;;  %v3208_v19 = vld [vmem:[#allocation4 + $0x68] sm:$0xff] }
  0xcf   :  { %1949 = vmatpush.bf16.msra.mxu0 %v3202_v44  ;;  %1518 = vmatmul.bf16.vlgmr.msrb.gmra.mxu1 %v3362_v22  ;;  %v3216_v22 = vld [vmem:[#allocation4 + $0xa8] sm:$0xff] }
  0xd0   :  { %1962 = vmatpush.bf16.msra.mxu1 %v3210_v45  ;;  %1531 = vmatmul.bf16.vlgmr.msrb.gmra.mxu2 %v3356_v18  ;;  %v3199_v18 = vld [vmem:[#allocation4 + $0x20] sm:$0xff]  ;;  %v3220_v43 = vld [vmem:[#allocation4 + $0xc8] sm:$0xff] }
  0xd1   :  { %1544 = vmatmul.bf16.vlgmr.msrb.gmra.mxu3 %v3360_v20  ;;  %1975 = vmatpush.bf16.msra.mxu2 %v3218_v47  ;;  %v1299_v20 = vadd.f32 %v1298_v56, %v252_v55  ;;  %v3231_v55 = vld [vmem:[#allocation4 + $0x120] sm:$0xff] }
  0xd2   :  { %1988 = vmatpush.bf16.msra.mxu3 %v3226_v10  ;;  %v3240_v10 = vld [vmem:[#allocation4 + $0x168] sm:$0xff] }
  0xd3   :  { %1950 = vmatpush.bf16.msra.mxu0 %v3201_v48  ;;  %v1312_v62 = vadd.f32 %v1311_v59, %v1299_v20  ;;  %v1324_v1 = vpop.f32.mrf.mxu2  ;;  %v1300_v6 = vpop.f32.mrf.mxu0  ;;  %v3219_v48 = vld [vmem:[#allocation4 + $0xc0] sm:$0xff]  ;;  %v3229_v20 = vld [vmem:[#allocation4 + $0x110] sm:$0xff] }
  0xd4   :  { %1963 = vmatpush.bf16.msra.mxu1 %v3209_v50  ;;  %v1337_v2 = vpop.f32.mrf.mxu3  ;;  %v1313_v9 = vpop.f32.mrf.mxu1 }
  0xd5   :  { %1976 = vmatpush.bf16.msra.mxu2 %v3217_v52  ;;  %v1325_v5 = vadd.f32 %v1324_v1, %v1312_v62  ;;  %v3233_v52 = vld [vmem:[#allocation4 + $0x130] sm:$0xff] }
  0xd6   :  { %1989 = vmatpush.bf16.msra.mxu3 %v3225_v14  ;;  %v3237_v14 = vld [vmem:[#allocation4 + $0x150] sm:$0xff] }
  0xd7   :  { %1951 = vmatpush.bf16.msra.mxu0 %v3200_v53  ;;  %v1338_v13 = vadd.f32 %v1337_v2, %v1325_v5  ;;  %v3242_v5 = vld [vmem:[#allocation4 + $0x178] sm:$0xff] }
  0xd8   :  { %1964 = vmatpush.bf16.msra.mxu1 %v3208_v19  ;;  %v3232_v19 = vld [vmem:[#allocation4 + $0x128] sm:$0xff] }
  0xd9   :  { %1977 = vmatpush.bf16.msra.mxu2 %v3216_v22  ;;  %v1550_v24 = vmax.f32 %v1338_v13, 0.0  ;;  %v3230_v22 = vld [vmem:[#allocation4 + $0x118] sm:$0xff]  ;;  %v255_v13 = vperm.slane %v3398_v51, 4 }
  0xda   :  { %1990 = vmatpush.bf16.msra.mxu3 %v3224_v26 }
  0xdb   :  { %1952 = vmatpush.bf16.msra.mxu0 %v3199_v18  ;;  %v1326_v17 = vpop.f32.mrf.mxu2  ;;  %v1556_v30 = vpack.c.bf16 %v1550_v24, %v1550_v24  ;;  %v254_v18 = vperm.slane %v3398_v51, 3 }
  0xdc   :  { %1965 = vmatpush.bf16.msra.mxu1 %v3207_v58  ;;  %v1339_v21 = vpop.f32.mrf.mxu3 }
  0xdd   :  { %1978 = vmatpush.bf16.msra.mxu2 %v3215_v60 }
  0xde   :  { %1991 = vmatpush.bf16.msra.mxu3 %v3223_v31 }
  0xdf   :  { %1953 = vmatpush.bf16.msra.mxu0 %v3198_v61  ;;  %v3228_v61 = vld [vmem:[#allocation4 + $0x108] sm:$0xff] }
  0xe0   :  { %1966 = vmatpush.bf16.msra.mxu1 %v3206_v0 }
  0xe1   :  { %1979 = vmatpush.bf16.msra.mxu2 %v3214_v3  ;;  %v3227_v3 = vld [vmem:[#allocation4 + $0x100] sm:$0xff] }
  0xe2   :  { %1992 = vmatpush.bf16.msra.mxu3 %v3222_v33 }
  0xe3   :  { %1954 = vmatpush.bf16.msra.mxu0 %v3197_v4 }
  0xe4   :  { %1967 = vmatpush.bf16.msra.mxu1 %v3205_v8 }
  0xe5   :  { %1980 = vmatpush.bf16.msra.mxu2 %v3213_v11  ;;  %v3239_v11 = vld [vmem:[#allocation4 + $0x160] sm:$0xff] }
  0xe6   :  { %1993 = vmatpush.bf16.msra.mxu3 %v3221_v38 }
  0xe7   :  { %1955 = vmatpush.bf16.msra.mxu0 %v3196_v12  ;;  %v3238_v12 = vld [vmem:[#allocation4 + $0x158] sm:$0xff] }
  0xe8   :  { %1968 = vmatpush.bf16.msra.mxu1 %v3204_v16 }
  0xe9   :  { %1981 = vmatpush.bf16.msra.mxu2 %v3212_v23  ;;  %v3236_v23 = vld [vmem:[#allocation4 + $0x148] sm:$0xff] }
  0xea   :  { %1994 = vmatpush.bf16.msra.mxu3 %v3220_v43 }
  0xeb   :  { %1956 = vmatpush.bf16.msra.mxu0 %v3195_v25  ;;  %v1350_v35 = vpop.f32.mrf.mxu0 }
  0xec   :  { %1969 = vmatpush.bf16.msra.mxu1 %v3203_v28  ;;  %v1351_v36 = vadd.f32 %v1350_v35, %v253_v34  ;;  %v1363_v37 = vpop.f32.mrf.mxu1  ;;  %v256_v35 = vperm.slane %v3398_v51, 5 }
  0xed   :  { %1982 = vmatpush.bf16.msra.mxu2 %v3211_v29  ;;  %v3235_v29 = vld [vmem:[#allocation4 + $0x140] sm:$0xff] }
  0xee   :  { %1957 = vmatmul.bf16.vlgmr.msra.gmra.mxu0 %v1555_v32  ;;  %v1364_v39 = vadd.f32 %v1363_v37, %v1351_v36  ;;  %1995 = vmatpush.bf16.msra.mxu3 %v3219_v48 }
  0xef   :  { %1970 = vmatmul.bf16.vlgmr.msra.gmra.mxu1 %v1556_v30  ;;  %2001 = vmatpush.bf16.msrb.mxu0 %v3234_v49 }
  0xf0   :  { %2014 = vmatpush.bf16.msrb.mxu1 %v3242_v5 }
  0xf3   :  { %v1376_v40 = vpop.f32.mrf.mxu2  ;;  %v1352_v45 = vpop.f32.mrf.mxu0  ;;  %2002 = vmatpush.bf16.msrb.mxu0 %v3233_v52 }
  0xf4   :  { %v1377_v41 = vadd.f32 %v1376_v40, %v1364_v39  ;;  %v1389_v42 = vpop.f32.mrf.mxu3  ;;  %v1365_v46 = vpop.f32.mrf.mxu1  ;;  %2015 = vmatpush.bf16.msrb.mxu1 %v3241_v7 }
  0xf6   :  { %v1390_v44 = vadd.f32 %v1389_v42, %v1377_v41 }
  0xf7   :  { %2003 = vmatpush.bf16.msrb.mxu0 %v3232_v19 }
  0xf8   :  { %v1551_v47 = vmax.f32 %v1390_v44, 0.0  ;;  %2016 = vmatpush.bf16.msrb.mxu1 %v3240_v10 }
  0xfa   :  { %v1557_v50 = vpack.c.bf16 %v1551_v47, %v1551_v47 }
  0xfb   :  { %v1378_v53 = vpop.f32.mrf.mxu2  ;;  %2004 = vmatpush.bf16.msrb.mxu0 %v3231_v55 }
  0xfc   :  { %1983 = vmatmul.bf16.vlgmr.msra.gmra.mxu2 %v1557_v50  ;;  %v1391_v54 = vpop.f32.mrf.mxu3  ;;  %2017 = vmatpush.bf16.msrb.mxu1 %v3239_v11  ;;  %v3249_v50 = vld [vmem:[%s3424_s4] ss:$0 sm:$0xff] }
  0xff   :  { %2005 = vmatpush.bf16.msrb.mxu0 %v3230_v22 }
 0x100   :  { %2018 = vmatpush.bf16.msrb.mxu1 %v3238_v12 }
 0x103   :  { %2006 = vmatpush.bf16.msrb.mxu0 %v3229_v20 }
 0x104   :  { %2019 = vmatpush.bf16.msrb.mxu1 %v3237_v14 }
 0x107   :  { %2007 = vmatpush.bf16.msrb.mxu0 %v3228_v61 }
 0x108   :  { %2020 = vmatpush.bf16.msrb.mxu1 %v3236_v23 }
 0x10b   :  { %v1402_v56 = vpop.f32.mrf.mxu0  ;;  %2008 = vmatpush.bf16.msrb.mxu0 %v3227_v3 }
 0x10c   :  { %v1403_v57 = vadd.f32 %v1402_v56, %v254_v18  ;;  %v1415_v58 = vpop.f32.mrf.mxu1  ;;  %2021 = vmatpush.bf16.msrb.mxu1 %v3235_v29 }
 0x10e   :  { %v1416_v59 = vadd.f32 %v1415_v58, %v1403_v57 }
 0x113   :  { %v1428_v60 = vpop.f32.mrf.mxu2  ;;  %v1404_v1 = vpop.f32.mrf.mxu0 }
 0x114   :  { %v1429_v62 = vadd.f32 %v1428_v60, %v1416_v59  ;;  %v1441_v63 = vpop.f32.mrf.mxu3  ;;  %v1417_v2 = vpop.f32.mrf.mxu1 }
 0x116   :  { %v1442_v0 = vadd.f32 %v1441_v63, %v1429_v62 }
 0x118   :  { %v1552_v4 = vmax.f32 %v1442_v0, 0.0  ;;  %v3250_v0 = vld [vmem:[%s3425_s5] ss:$0 sm:$0xff] }
 0x11a   :  { %v1558_v6 = vpack.c.bf16 %v1552_v4, %v1552_v4 }
 0x11b   :  { %v1430_v8 = vpop.f32.mrf.mxu2 }
 0x11c   :  { %1996 = vmatmul.bf16.vlgmr.msra.gmra.mxu3 %v1558_v6  ;;  %v1443_v9 = vpop.f32.mrf.mxu3 }
 0x12b   :  { %v1454_v15 = vpop.f32.mrf.mxu0 }
 0x12c   :  { %v1455_v16 = vadd.f32 %v1454_v15, %v255_v13  ;;  %v1467_v17 = vpop.f32.mrf.mxu1 }
 0x12e   :  { %v1468_v21 = vadd.f32 %v1467_v17, %v1455_v16 }
 0x133   :  { %v1480_v24 = vpop.f32.mrf.mxu2  ;;  %v1456_v28 = vpop.f32.mrf.mxu0 }
 0x134   :  { %v1481_v25 = vadd.f32 %v1480_v24, %v1468_v21  ;;  %v1493_v26 = vpop.f32.mrf.mxu3  ;;  %v1469_v30 = vpop.f32.mrf.mxu1 }
 0x136   :  { %v1494_v27 = vadd.f32 %v1493_v26, %v1481_v25 }
 0x138   :  { %v1553_v31 = vmax.f32 %v1494_v27, 0.0 }
 0x13a   :  { %v1559_v32 = vpack.c.bf16 %v1553_v31, %v1553_v31 }
 0x13b   :  { %v1482_v33 = vpop.f32.mrf.mxu2 }
 0x13c   :  { %2009 = vmatmul.bf16.vlgmr.msrb.gmra.mxu0 %v1559_v32  ;;  %v1495_v34 = vpop.f32.mrf.mxu3 }
 0x14b   :  { %v1506_v36 = vpop.f32.mrf.mxu0 }
 0x14c   :  { %v1507_v37 = vadd.f32 %v1506_v36, %v256_v35  ;;  %v1519_v38 = vpop.f32.mrf.mxu1 }
 0x14e   :  { %v1520_v39 = vadd.f32 %v1519_v38, %v1507_v37 }
 0x153   :  { %v1532_v40 = vpop.f32.mrf.mxu2  ;;  %v1508_v43 = vpop.f32.mrf.mxu0 }
 0x154   :  { %v1533_v41 = vadd.f32 %v1532_v40, %v1520_v39  ;;  %v1545_v42 = vpop.f32.mrf.mxu3  ;;  %v1521_v44 = vpop.f32.mrf.mxu1 }
 0x156   :  { %v1546_v45 = vadd.f32 %v1545_v42, %v1533_v41 }
 0x158   :  { %v1554_v46 = vmax.f32 %v1546_v45, 0.0 }
 0x15a   :  { %v1560_v47 = vpack.c.bf16 %v1554_v46, %v1554_v46 }
 0x15b   :  { %v1534_v48 = vpop.f32.mrf.mxu2 }
 0x15c   :  { %v1547_v49 = vpop.f32.mrf.mxu3  ;;  %2022 = vmatmul.bf16.vlgmr.msrb.gmra.mxu1 %v1560_v47 }
 0x16b   :  { %v1958_v51 = vpop.f32.mrf.mxu0 }
 0x16c   :  { %v1959_v52 = vadd.f32 %v3249_v50, %v1958_v51  ;;  %v1971_v53 = vpop.f32.mrf.mxu1 }
 0x16e   :  { %v1972_v54 = vadd.f32 %v1971_v53, %v1959_v52 }
 0x173   :  { %v1960_v19 = vpop.f32.mrf.mxu0 }
 0x174   :  { %v1973_v55 = vpop.f32.mrf.mxu1 }
 0x17f   :  { %v1984_v22 = vpop.f32.mrf.mxu2 }
 0x180   :  { %v1985_v18 = vadd.f32 %v1984_v22, %v1972_v54 }
 0x187   :  { %v1986_v56 = vpop.f32.mrf.mxu2 }
 0x19f   :  { %v1997_v57 = vpop.f32.mrf.mxu3 }
 0x1a0   :  { %v1998_v60 = vadd.f32 %v1997_v57, %v1985_v18 }
 0x1a7   :  { %v1999_v58 = vpop.f32.mrf.mxu3 }
 0x1b9   :  { %v2010_v20 = vpop.f32.mrf.mxu0 }
 0x1ba   :  { %v2011_v61 = vadd.f32 %v2010_v20, %v1998_v60 }
 0x1c1   :  { %v2012_v59 = vpop.f32.mrf.mxu0 }
 0x1d9   :  { %v2023_v62 = vpop.f32.mrf.mxu1 }
 0x1da   :  { %v2024_v63 = vadd.f32 %v2023_v62, %v2011_v61 }
 0x1dc   :  { %v2027_v1 = vmax.f32 %v2024_v63, 0.0 }
 0x1de   :  { %v2032_v2 = vmul.f32 %v3250_v0, %v2027_v1 }
 0x1e0   :  { %2033 = vadd.xlane.f32.xlu0 %v2032_v2 }
 0x1e1   :  { %v2025_v3 = vpop.f32.mrf.mxu1 }
 0x253   :  { %v2034_v4 = vpop.xlane.xlu0 %2033 }
 0x254   :  { %2036 = vst.msk [vmem:[%s3426_s6] sm:$0xff] %vm2035_vm0, %v2034_v4 }
 0x255   :  { %2041 = vsyncpa [#allocation3], 1 }
 0x256   :  { %2042 = vsyncpa [#allocation5], 1 }

</bundles_post_ra>
